<compile_context>
chip_gen: v7x
topology: tpu7x:2x2x1
jax: 0.10.0
libtpu: 0.0.40
codegen_flags: <defaults>
</compile_context>

<pallas_src>
import functools

import jax
import jax.numpy as jnp
import numpy as np
from jax.experimental import pallas as pl
from jax.experimental.pallas import tpu as pltpu

BN_EPS = 1e-5
LANE = 128


def _round_up(x, m):
    return ((x + m - 1) // m) * m


def _pick_vmem_limit():
    """Generation-aware scoped-VMEM request (review: don't ask for all of v7x's 64 MiB)."""
    try:
        cap = getattr(pltpu.get_tpu_info(), "vmem_capacity_bytes", 128 * 1024 * 1024)
        return int(min(cap * 3 // 4, 64 * 1024 * 1024))
    except Exception:
        return 32 * 1024 * 1024


VMEM_LIMIT = _pick_vmem_limit()


# ---------------------------------------------------------------------------
# Pallas kernels
# ---------------------------------------------------------------------------
def conv_bn_relu_kernel(x_ref, w_ref, g_ref, b_ref, gs_ref, gb_ref, o_ref, *, inv_count):
    """Fused Conv2d(k=2, s=2, bias=False) + BatchNorm2d(batch stats) + ReLU.

    Layouts (all 2-D, lane-dense, un-padded):
      x_ref : (B*Ho, 2*W*C)     two input rows (kh=0,1) merged into one lane row
      w_ref : (2*W*C, Wo*Cout)  conv weight expanded into the block-structured
                                merged-row -> output-row matrix (im2col folded
                                into the static weight at pack time)
      g_ref, b_ref : (1, Wo*Cout)  gamma / beta tiled over the Wo lane groups (f32)
      gs_ref : (Wo*Cout, Cout)  0/1 matrix summing the Wo lane groups per channel
      gb_ref : (Cout, Wo*Cout)  0/1 matrix broadcasting per-channel stats back to lanes
      o_ref : (B*Ho, Wo*Cout)   activation dtype (f32 or bf16)
    """
    # MXU matmul; bf16 inputs (if enabled) with f32 accumulation.
    y = jnp.dot(x_ref[...], w_ref[...], preferred_element_type=jnp.float32)

    # Per-channel batch statistics: sublane reduce over rows, then a tiny matmul
    # with the 0/1 group-sum / group-broadcast matrices to pool the Wo lane groups.
    row_sum = jnp.sum(y, axis=0, keepdims=True)                       # (1, Wo*Cout)
    mean_c = jnp.dot(row_sum, gs_ref[...],
                     preferred_element_type=jnp.float32) * inv_count  # (1, Cout)
    mean_l = jnp.dot(mean_c, gb_ref[...],
                     preferred_element_type=jnp.float32)              # (1, Wo*Cout)

    d = y - mean_l                                                    # centered (stable var)
    var_c = jnp.dot(jnp.sum(d * d, axis=0, keepdims=True), gs_ref[...],
                    preferred_element_type=jnp.float32) * inv_count
    var_l = jnp.dot(var_c, gb_ref[...], preferred_element_type=jnp.float32)

    scale = g_ref[...] * jax.lax.rsqrt(var_l + BN_EPS)
    o_ref[...] = jnp.maximum(d * scale + b_ref[...], 0.0).astype(o_ref.dtype)


def latent_head_kernel(h_ref, w_ref, b_ref, eps_ref, o_ref, *, latent_dim):
    """Fused [fc_mu | fc_log_var] matmul + reparameterization.

    h_ref  : (B, Hd)        hidden state (bf16 or f32)
    w_ref  : (Hd, 2L)       fused, row-permuted [W_mu | W_lv]
    b_ref  : (1, 2L)        fused bias (f32)
    eps_ref: (B, L)         standard-normal noise (f32)
    o_ref  : (B, pad(3L,128))  single lane-dense output: [mu | log_var | z | 0-pad]
    """
    res = jnp.dot(h_ref[...], w_ref[...], preferred_element_type=jnp.float32) + b_ref[...]
    mu = res[:, :latent_dim]
    lv = res[:, latent_dim:2 * latent_dim]
    z = mu + eps_ref[...] * jnp.exp(lv * 0.5)

    pad = o_ref.shape[1] - 3 * latent_dim
    pieces = [res[:, :2 * latent_dim], z]
    if pad > 0:
        pieces.append(jnp.zeros((z.shape[0], pad), jnp.float32))
    o_ref[...] = jnp.concatenate(pieces, axis=1)   # one unmasked 128-lane store


# ---------------------------------------------------------------------------
# Pallas wrappers
# ---------------------------------------------------------------------------
def conv_bn_relu_layer(x_flat, layer):
    """x_flat: (B*H, W*C) activation; returns (B*Ho, Wo*Cout), both lane-dense."""
    rows, l_in = x_flat.shape
    assert rows % 2 == 0, "kernel=stride=2 layer requires an even input height"
    mo = rows // 2
    x_m = x_flat.reshape(mo, 2 * l_in)          # free contiguous reshape (row pairs)
    w = layer["w_cat"]
    n_out = w.shape[1]
    cout = layer["cout"]
    wo = layer["wo"]
    inv_count = 1.0 / float(mo * wo)            # 1 / (B*Ho*Wo) per-channel sample count

    return pl.pallas_call(
        functools.partial(conv_bn_relu_kernel, inv_count=inv_count),
        grid=(1,),
        in_specs=[
            pl.BlockSpec((mo, 2 * l_in), lambda i: (0, 0)),   # merged activation
            pl.BlockSpec((2 * l_in, n_out), lambda i: (0, 0)),  # packed conv weight
            pl.BlockSpec((1, n_out), lambda i: (0, 0)),       # gamma (lane-tiled)
            pl.BlockSpec((1, n_out), lambda i: (0, 0)),       # beta  (lane-tiled)
            pl.BlockSpec((n_out, cout), lambda i: (0, 0)),    # group-sum matrix
            pl.BlockSpec((cout, n_out), lambda i: (0, 0)),    # group-broadcast matrix
        ],
        out_specs=pl.BlockSpec((mo, n_out), lambda i: (0, 0)),
        out_shape=jax.ShapeDtypeStruct((mo, n_out), x_m.dtype),
        compiler_params=pltpu.CompilerParams(vmem_limit_bytes=VMEM_LIMIT),
    )(x_m, w, layer["gamma_l"], layer["beta_l"], layer["gsum"], layer["gbcast"])


def latent_head(hidden, w_cat, b_cat, eps, latent_dim):
    bsz, hd = hidden.shape
    lc = w_cat.shape[1]                      # 2 * latent_dim
    n_out = _round_up(3 * latent_dim, LANE)  # fused lane-dense [mu|lv|z|pad]

    out = pl.pallas_call(
        functools.partial(latent_head_kernel, latent_dim=latent_dim),
        grid=(1,),
        in_specs=[
            pl.BlockSpec((bsz, hd), lambda i: (0, 0)),
            pl.BlockSpec((hd, lc), lambda i: (0, 0)),
            pl.BlockSpec((1, lc), lambda i: (0, 0)),
            pl.BlockSpec((bsz, latent_dim), lambda i: (0, 0)),
        ],
        out_specs=pl.BlockSpec((bsz, n_out), lambda i: (0, 0)),
        out_shape=jax.ShapeDtypeStruct((bsz, n_out), jnp.float32),
        compiler_params=pltpu.CompilerParams(vmem_limit_bytes=VMEM_LIMIT),
    )(hidden, w_cat, b_cat, eps)

    mu = out[:, :latent_dim]
    lv = out[:, latent_dim:2 * latent_dim]
    z = out[:, 2 * latent_dim:3 * latent_dim]
    return z, mu, lv


# ---------------------------------------------------------------------------
# Parameter construction / packing
# ---------------------------------------------------------------------------
def calculate_channel_sizes(image_channels, max_filters, num_layers):
    sizes = [(image_channels, max_filters // int(np.power(2, num_layers - 1)))]
    for _ in range(1, num_layers):
        prev = sizes[-1][-1]
        sizes.append((prev, prev * 2))
    return sizes


def init_params(key, image_channels, max_filters, num_layers, latent_dim, input_hw):
    """Torch-layout parameters (used by the reference and by pack_params)."""
    sizes = calculate_channel_sizes(image_channels, max_filters, num_layers)
    params = {"conv": []}
    img = input_hw
    for (cin, cout) in sizes:
        key, kw_, kg, kb = jax.random.split(key, 4)
        w = jax.random.normal(kw_, (2, 2, cin, cout), jnp.float32) * 0.1
        gamma = 1.0 + 0.1 * jax.random.normal(kg, (cout,), jnp.float32)
        beta = 0.1 * jax.random.normal(kb, (cout,), jnp.float32)
        params["conv"].append((w, gamma, beta))
        img = (img - 2) // 2 + 1
    hidden_pt = sizes[-1][1] * img * img
    key, kmu, klv, kbm, kbl = jax.random.split(key, 5)
    params["w_mu"] = jax.random.normal(kmu, (hidden_pt, latent_dim), jnp.float32) * 0.05
    params["b_mu"] = 0.05 * jax.random.normal(kbm, (latent_dim,), jnp.float32)
    params["w_lv"] = jax.random.normal(klv, (hidden_pt, latent_dim), jnp.float32) * 0.05
    params["b_lv"] = 0.05 * jax.random.normal(kbl, (latent_dim,), jnp.float32)
    return params, hidden_pt, img


def pack_params(params, image_hw, act_dtype):
    """Kernel-ready parameters: im2col folded into the conv weights, fc rows permuted."""
    packed = {"conv": [], "act_dtype": act_dtype}
    h = image_hw
    for (w, gamma, beta) in params["conv"]:
        kh, kw, cin, cout = w.shape
        assert kh == 2 and kw == 2 and h % 2 == 0
        wo = h // 2
        l_in = h * cin              # lanes of one input row (W*C), square images
        n_out = wo * cout
        w_np = np.asarray(w, np.float32)

        # Merged-row (2*W*C) -> output-row (Wo*Cout) matrix:
        # wcat[kh*L + (2*wo+kw)*C + c, wo*Cout + co] = w[kh, kw, c, co]
        wcat = np.zeros((2 * l_in, n_out), np.float32)
        for khi in range(2):
            for woi in range(wo):
                for kwi in range(2):
                    r0 = khi * l_in + (2 * woi + kwi) * cin
                    wcat[r0:r0 + cin, woi * cout:(woi + 1) * cout] = w_np[khi, kwi]

        # 0/1 channel-group sum / broadcast matrices for BN stats over the (wo, c) lanes.
        gsum = np.zeros((n_out, cout), np.float32)
        gsum[np.arange(n_out), np.arange(n_out) % cout] = 1.0

        packed["conv"].append({
            "w_cat": jnp.asarray(wcat, act_dtype),
            "gamma_l": jnp.asarray(np.tile(np.asarray(gamma, np.float32), wo)[None, :]),
            "beta_l": jnp.asarray(np.tile(np.asarray(beta, np.float32), wo)[None, :]),
            "gsum": jnp.asarray(gsum),
            "gbcast": jnp.asarray(gsum.T.copy()),
            "cout": cout,
            "wo": wo,
        })
        h = wo

    # Latent head: permute fc weight ROWS so hidden can stay in (h, w, c) order
    # (torch's Flatten is (c, h, w)); fuse mu|log_var into one matmul.
    cout_last = params["conv"][-1][0].shape[-1]
    ho = wo = h
    latent_dim = params["w_mu"].shape[1]

    def permute_rows(w_fc):
        w4 = np.asarray(w_fc, np.float32).reshape(cout_last, ho, wo, latent_dim)
        return w4.transpose(1, 2, 0, 3).reshape(ho * wo * cout_last, latent_dim)

    w_cat = np.concatenate([permute_rows(params["w_mu"]), permute_rows(params["w_lv"])], axis=1)
    b_cat = np.concatenate([np.asarray(params["b_mu"], np.float32),
                            np.asarray(params["b_lv"], np.float32)])[None, :]
    packed["w_cat"] = jnp.asarray(w_cat, act_dtype)
    packed["b_cat"] = jnp.asarray(b_cat, jnp.float32)
    packed["latent_dim"] = latent_dim
    return packed


# ---------------------------------------------------------------------------
# Forward pass (Pallas) and pure-JAX reference
# ---------------------------------------------------------------------------
def encoder_forward(packed, x_nchw, eps):
    # The only wrapper-side data movement: one NCHW -> NHWC transpose of the input.
    x = jnp.transpose(x_nchw, (0, 2, 3, 1)).astype(packed["act_dtype"])
    b, h, w, c = x.shape
    x = x.reshape(b * h, w * c)                 # (B*H, W*C), free contiguous reshape
    for layer in packed["conv"]:
        x = conv_bn_relu_layer(x, layer)        # -> (B*Ho, Wo*Cout), next layer's input
    hidden = x.reshape(b, -1)                   # (h, w, c) flatten; fc rows pre-permuted
    return latent_head(hidden, packed["w_cat"], packed["b_cat"], eps, packed["latent_dim"])


def reference_forward(params, x_nchw, eps, act_dtype=jnp.float32):
    """Pure-JAX reference in the PyTorch layout, fed with the same dtype plan."""
    x = jnp.transpose(x_nchw, (0, 2, 3, 1)).astype(act_dtype)
    for (w, gamma, beta) in params["conv"]:
        bsz, h, wd, c = x.shape
        ho, wo = h // 2, wd // 2
        p = x[:, :2 * ho, :2 * wo, :].reshape(bsz, ho, 2, wo, 2, c)
        p = p.transpose(0, 1, 3, 2, 4, 5).reshape(bsz * ho * wo, 4 * c)
        y = jnp.dot(p, w.reshape(4 * c, -1).astype(act_dtype),
                    preferred_element_type=jnp.float32)
        mean = jnp.mean(y, axis=0, keepdims=True)
        var = jnp.mean((y - mean) ** 2, axis=0, keepdims=True)
        y = (y - mean) * jax.lax.rsqrt(var + BN_EPS) * gamma + beta
        x = jnp.maximum(y, 0.0).astype(act_dtype).reshape(bsz, ho, wo, -1)
    bsz = x.shape[0]
    hidden = jnp.transpose(x, (0, 3, 1, 2)).reshape(bsz, -1)   # torch Flatten (C,H,W)
    mu = jnp.dot(hidden, params["w_mu"].astype(act_dtype),
                 preferred_element_type=jnp.float32) + params["b_mu"]
    log_var = jnp.dot(hidden, params["w_lv"].astype(act_dtype),
                      preferred_element_type=jnp.float32) + params["b_lv"]
    z = mu + eps * jnp.exp(0.5 * log_var)
    return z, mu, log_var


# ---------------------------------------------------------------------------
if __name__ == "__main__":
    # Small config consistent with the module: image_channels=4, max_filters=64,
    # num_layers=3, kernel=stride=2, latent_dim=32, 16x16 input, batch=2.
    B, C, HW = 2, 4, 16
    MAX_FILTERS, NUM_LAYERS, LATENT = 64, 3, 32

    key = jax.random.PRNGKey(0)
    key, k_x, k_eps, k_p = jax.random.split(key, 4)

    params, hidden_pt, final_hw = init_params(
        k_p, image_channels=C, max_filters=MAX_FILTERS, num_layers=NUM_LAYERS,
        latent_dim=LATENT, input_hw=HW)

    x = jax.random.normal(k_x, (B, C, HW, HW), jnp.float32)    # NCHW input
    eps = jax.random.normal(k_eps, (B, LATENT), jnp.float32)   # randn_like(mu)

    # f32 path: tight check of the layout / weight-packing math.
    # bf16 path (perf default): compared against a reference fed with the same
    # bf16 inputs (f32 accumulation + f32 BN), so the tolerance stays moderate.
    for act_dtype, tol in ((jnp.float32, 2e-4), (jnp.bfloat16, 1e-2)):
        packed = pack_params(params, HW, act_dtype)
        fwd = jax.jit(functools.partial(encoder_forward, packed))
        z, mu, log_var = fwd(x, eps)
        jax.block_until_ready((z, mu, log_var))

        z_r, mu_r, lv_r = reference_forward(params, x, eps, act_dtype)
        np.testing.assert_allclose(np.asarray(mu), np.asarray(mu_r), atol=tol, rtol=tol)
        np.testing.assert_allclose(np.asarray(log_var), np.asarray(lv_r), atol=tol, rtol=tol)
        np.testing.assert_allclose(np.asarray(z), np.asarray(z_r), atol=tol, rtol=tol)
        assert z.shape == (B, LATENT) and mu.shape == (B, LATENT) and log_var.shape == (B, LATENT)

    print("KERNEL_OK")
</pallas_src>

<mosaic_0001>
module attributes {stable_mosaic.version = 11 : i64} {
  func.func @conv_bn_relu_kernel(%arg0: i32, %arg1: memref<16x128xf32, #tpu.memory_space<vmem>>, %arg2: memref<128x128xf32, #tpu.memory_space<vmem>>, %arg3: memref<1x128xf32, #tpu.memory_space<vmem>>, %arg4: memref<1x128xf32, #tpu.memory_space<vmem>>, %arg5: memref<128x16xf32, #tpu.memory_space<vmem>>, %arg6: memref<16x128xf32, #tpu.memory_space<vmem>>, %arg7: memref<16x128xf32, #tpu.memory_space<vmem>>) attributes {dimension_semantics = [#tpu.dimension_semantics<arbitrary>], iteration_bounds = array<i64: 1>, scalar_prefetch = 0 : i64, scratch_operands = 0 : i64, tpu.core_type = #tpu.core_type<tc>, window_params = [{pipeline_mode = #tpu.pipeline_mode<synchronous>, transform_indices = @transform_0, window_bounds = array<i64: 16, 128>}, {pipeline_mode = #tpu.pipeline_mode<synchronous>, transform_indices = @transform_1, window_bounds = array<i64: 128, 128>}, {pipeline_mode = #tpu.pipeline_mode<synchronous>, transform_indices = @transform_2, window_bounds = array<i64: 1, 128>}, {pipeline_mode = #tpu.pipeline_mode<synchronous>, transform_indices = @transform_3, window_bounds = array<i64: 1, 128>}, {pipeline_mode = #tpu.pipeline_mode<synchronous>, transform_indices = @transform_4, window_bounds = array<i64: 128, 16>}, {pipeline_mode = #tpu.pipeline_mode<synchronous>, transform_indices = @transform_5, window_bounds = array<i64: 16, 128>}, {pipeline_mode = #tpu.pipeline_mode<synchronous>, transform_indices = @transform_6, window_bounds = array<i64: 16, 128>}]} {
    %c0 = arith.constant 0 : index
    %c0_0 = arith.constant 0 : index
    %0 = vector.load %arg1[%c0, %c0_0] : memref<16x128xf32, #tpu.memory_space<vmem>>, vector<16x128xf32>
    %c0_1 = arith.constant 0 : index
    %c0_2 = arith.constant 0 : index
    %1 = vector.load %arg2[%c0_1, %c0_2] : memref<128x128xf32, #tpu.memory_space<vmem>>, vector<128x128xf32>
    %cst = arith.constant dense<0.000000e+00> : vector<16x128xf32>
    %2 = tpu.matmul %0, %1, %cst {dimension_numbers = #tpu.dot_dimension_numbers<[1], [0], [0], [1], [0, 0, 1, 1], [], []>} : vector<16x128xf32>, vector<128x128xf32>, vector<16x128xf32> -> vector<16x128xf32>
    %cst_3 = arith.constant dense<0.000000e+00> : vector<128xf32>
    %3 = vector.multi_reduction <add>, %2, %cst_3 [0] : vector<16x128xf32> to vector<128xf32>
    %4 = vector.shape_cast %3 : vector<128xf32> to vector<1x128xf32>
    %c0_4 = arith.constant 0 : index
    %c0_5 = arith.constant 0 : index
    %5 = vector.load %arg5[%c0_4, %c0_5] : memref<128x16xf32, #tpu.memory_space<vmem>>, vector<128x16xf32>
    %cst_6 = arith.constant dense<0.000000e+00> : vector<1x16xf32>
    %6 = tpu.matmul %4, %5, %cst_6 {dimension_numbers = #tpu.dot_dimension_numbers<[1], [0], [0], [1], [0, 0, 1, 1], [], []>} : vector<1x128xf32>, vector<128x16xf32>, vector<1x16xf32> -> vector<1x16xf32>
    %cst_7 = arith.constant 7.812500e-03 : f32
    %7 = vector.broadcast %cst_7 : f32 to vector<1x16xf32>
    %8 = arith.mulf %6, %7 : vector<1x16xf32>
    %c0_8 = arith.constant 0 : index
    %c0_9 = arith.constant 0 : index
    %9 = vector.load %arg6[%c0_8, %c0_9] : memref<16x128xf32, #tpu.memory_space<vmem>>, vector<16x128xf32>
    %cst_10 = arith.constant dense<0.000000e+00> : vector<1x128xf32>
    %10 = tpu.matmul %8, %9, %cst_10 {dimension_numbers = #tpu.dot_dimension_numbers<[1], [0], [0], [1], [0, 0, 1, 1], [], []>} : vector<1x16xf32>, vector<16x128xf32>, vector<1x128xf32> -> vector<1x128xf32>
    %11 = vector.broadcast %10 : vector<1x128xf32> to vector<16x128xf32>
    %12 = arith.subf %2, %11 : vector<16x128xf32>
    %13 = arith.mulf %12, %12 : vector<16x128xf32>
    %cst_11 = arith.constant dense<0.000000e+00> : vector<128xf32>
    %14 = vector.multi_reduction <add>, %13, %cst_11 [0] : vector<16x128xf32> to vector<128xf32>
    %15 = vector.shape_cast %14 : vector<128xf32> to vector<1x128xf32>
    %c0_12 = arith.constant 0 : index
    %c0_13 = arith.constant 0 : index
    %16 = vector.load %arg5[%c0_12, %c0_13] : memref<128x16xf32, #tpu.memory_space<vmem>>, vector<128x16xf32>
    %cst_14 = arith.constant dense<0.000000e+00> : vector<1x16xf32>
    %17 = tpu.matmul %15, %16, %cst_14 {dimension_numbers = #tpu.dot_dimension_numbers<[1], [0], [0], [1], [0, 0, 1, 1], [], []>} : vector<1x128xf32>, vector<128x16xf32>, vector<1x16xf32> -> vector<1x16xf32>
    %cst_15 = arith.constant 7.812500e-03 : f32
    %18 = vector.broadcast %cst_15 : f32 to vector<1x16xf32>
    %19 = arith.mulf %17, %18 : vector<1x16xf32>
    %c0_16 = arith.constant 0 : index
    %c0_17 = arith.constant 0 : index
    %20 = vector.load %arg6[%c0_16, %c0_17] : memref<16x128xf32, #tpu.memory_space<vmem>>, vector<16x128xf32>
    %cst_18 = arith.constant dense<0.000000e+00> : vector<1x128xf32>
    %21 = tpu.matmul %19, %20, %cst_18 {dimension_numbers = #tpu.dot_dimension_numbers<[1], [0], [0], [1], [0, 0, 1, 1], [], []>} : vector<1x16xf32>, vector<16x128xf32>, vector<1x128xf32> -> vector<1x128xf32>
    %c0_19 = arith.constant 0 : index
    %c0_20 = arith.constant 0 : index
    %22 = vector.load %arg3[%c0_19, %c0_20] : memref<1x128xf32, #tpu.memory_space<vmem>>, vector<1x128xf32>
    %cst_21 = arith.constant 9.99999974E-6 : f32
    %23 = vector.broadcast %cst_21 : f32 to vector<1x128xf32>
    %24 = arith.addf %21, %23 : vector<1x128xf32>
    %25 = math.rsqrt %24 : vector<1x128xf32>
    %26 = arith.mulf %22, %25 : vector<1x128xf32>
    %27 = vector.broadcast %26 : vector<1x128xf32> to vector<16x128xf32>
    %28 = arith.mulf %12, %27 : vector<16x128xf32>
    %c0_22 = arith.constant 0 : index
    %c0_23 = arith.constant 0 : index
    %29 = vector.load %arg4[%c0_22, %c0_23] : memref<1x128xf32, #tpu.memory_space<vmem>>, vector<1x128xf32>
    %30 = vector.broadcast %29 : vector<1x128xf32> to vector<16x128xf32>
    %31 = arith.addf %28, %30 : vector<16x128xf32>
    %cst_24 = arith.constant 0.000000e+00 : f32
    %32 = vector.broadcast %cst_24 : f32 to vector<16x128xf32>
    %33 = arith.maximumf %31, %32 : vector<16x128xf32>
    %c0_25 = arith.constant 0 : index
    %c0_26 = arith.constant 0 : index
    %34 = vector.load %arg7[%c0_25, %c0_26] : memref<16x128xf32, #tpu.memory_space<vmem>>, vector<16x128xf32>
    tpu.vector_store %arg7[%c0_25, %c0_26], %33 {strides = array<i32>} : memref<16x128xf32, #tpu.memory_space<vmem>>, vector<16x128xf32>,
    return
  }
  func.func @transform_0(%arg0: i32) -> (i32, i32) {
    %c0_i32 = arith.constant 0 : i32
    %c0_i32_0 = arith.constant 0 : i32
    %c0_i32_1 = arith.constant 0 : i32
    return %c0_i32, %c0_i32_0 : i32, i32
  }
  func.func @transform_1(%arg0: i32) -> (i32, i32) {
    %c0_i32 = arith.constant 0 : i32
    %c0_i32_0 = arith.constant 0 : i32
    %c0_i32_1 = arith.constant 0 : i32
    return %c0_i32, %c0_i32_0 : i32, i32
  }
  func.func @transform_2(%arg0: i32) -> (i32, i32) {
    %c0_i32 = arith.constant 0 : i32
    %c0_i32_0 = arith.constant 0 : i32
    %c0_i32_1 = arith.constant 0 : i32
    return %c0_i32, %c0_i32_0 : i32, i32
  }
  func.func @transform_3(%arg0: i32) -> (i32, i32) {
    %c0_i32 = arith.constant 0 : i32
    %c0_i32_0 = arith.constant 0 : i32
    %c0_i32_1 = arith.constant 0 : i32
    return %c0_i32, %c0_i32_0 : i32, i32
  }
  func.func @transform_4(%arg0: i32) -> (i32, i32) {
    %c0_i32 = arith.constant 0 : i32
    %c0_i32_0 = arith.constant 0 : i32
    %c0_i32_1 = arith.constant 0 : i32
    return %c0_i32, %c0_i32_0 : i32, i32
  }
  func.func @transform_5(%arg0: i32) -> (i32, i32) {
    %c0_i32 = arith.constant 0 : i32
    %c0_i32_0 = arith.constant 0 : i32
    %c0_i32_1 = arith.constant 0 : i32
    return %c0_i32, %c0_i32_0 : i32, i32
  }
  func.func @transform_6(%arg0: i32) -> (i32, i32) {
    %c0_i32 = arith.constant 0 : i32
    %c0_i32_0 = arith.constant 0 : i32
    %c0_i32_1 = arith.constant 0 : i32
    return %c0_i32, %c0_i32_0 : i32, i32
  }
}

module attributes {stable_mosaic.version = 11 : i64} {
  func.func @conv_bn_relu_kernel(%arg0: i32, %arg1: memref<4x256xf32, #tpu.memory_space<vmem>>, %arg2: memref<256x128xf32, #tpu.memory_space<vmem>>, %arg3: memref<1x128xf32, #tpu.memory_space<vmem>>, %arg4: memref<1x128xf32, #tpu.memory_space<vmem>>, %arg5: memref<128x64xf32, #tpu.memory_space<vmem>>, %arg6: memref<64x128xf32, #tpu.memory_space<vmem>>, %arg7: memref<4x128xf32, #tpu.memory_space<vmem>>) attributes {dimension_semantics = [#tpu.dimension_semantics<arbitrary>], iteration_bounds = array<i64: 1>, scalar_prefetch = 0 : i64, scratch_operands = 0 : i64, tpu.core_type = #tpu.core_type<tc>, window_params = [{pipeline_mode = #tpu.pipeline_mode<synchronous>, transform_indices = @transform_0, window_bounds = array<i64: 4, 256>}, {pipeline_mode = #tpu.pipeline_mode<synchronous>, transform_indices = @transform_1, window_bounds = array<i64: 256, 128>}, {pipeline_mode = #tpu.pipeline_mode<synchronous>, transform_indices = @transform_2, window_bounds = array<i64: 1, 128>}, {pipeline_mode = #tpu.pipeline_mode<synchronous>, transform_indices = @transform_3, window_bounds = array<i64: 1, 128>}, {pipeline_mode = #tpu.pipeline_mode<synchronous>, transform_indices = @transform_4, window_bounds = array<i64: 128, 64>}, {pipeline_mode = #tpu.pipeline_mode<synchronous>, transform_indices = @transform_5, window_bounds = array<i64: 64, 128>}, {pipeline_mode = #tpu.pipeline_mode<synchronous>, transform_indices = @transform_6, window_bounds = array<i64: 4, 128>}]} {
    %c0 = arith.constant 0 : index
    %c0_0 = arith.constant 0 : index
    %0 = vector.load %arg1[%c0, %c0_0] : memref<4x256xf32, #tpu.memory_space<vmem>>, vector<4x256xf32>
    %c0_1 = arith.constant 0 : index
    %c0_2 = arith.constant 0 : index
    %1 = vector.load %arg2[%c0_1, %c0_2] : memref<256x128xf32, #tpu.memory_space<vmem>>, vector<256x128xf32>
    %cst = arith.constant dense<0.000000e+00> : vector<4x128xf32>
    %2 = tpu.matmul %0, %1, %cst {dimension_numbers = #tpu.dot_dimension_numbers<[1], [0], [0], [1], [0, 0, 1, 1], [], []>} : vector<4x256xf32>, vector<256x128xf32>, vector<4x128xf32> -> vector<4x128xf32>
    %cst_3 = arith.constant dense<0.000000e+00> : vector<128xf32>
    %3 = vector.multi_reduction <add>, %2, %cst_3 [0] : vector<4x128xf32> to vector<128xf32>
    %4 = vector.shape_cast %3 : vector<128xf32> to vector<1x128xf32>
    %c0_4 = arith.constant 0 : index
    %c0_5 = arith.constant 0 : index
    %5 = vector.load %arg5[%c0_4, %c0_5] : memref<128x64xf32, #tpu.memory_space<vmem>>, vector<128x64xf32>
    %cst_6 = arith.constant dense<0.000000e+00> : vector<1x64xf32>
    %6 = tpu.matmul %4, %5, %cst_6 {dimension_numbers = #tpu.dot_dimension_numbers<[1], [0], [0], [1], [0, 0, 1, 1], [], []>} : vector<1x128xf32>, vector<128x64xf32>, vector<1x64xf32> -> vector<1x64xf32>
    %cst_7 = arith.constant 1.250000e-01 : f32
    %7 = vector.broadcast %cst_7 : f32 to vector<1x64xf32>
    %8 = arith.mulf %6, %7 : vector<1x64xf32>
    %c0_8 = arith.constant 0 : index
    %c0_9 = arith.constant 0 : index
    %9 = vector.load %arg6[%c0_8, %c0_9] : memref<64x128xf32, #tpu.memory_space<vmem>>, vector<64x128xf32>
    %cst_10 = arith.constant dense<0.000000e+00> : vector<1x128xf32>
    %10 = tpu.matmul %8, %9, %cst_10 {dimension_numbers = #tpu.dot_dimension_numbers<[1], [0], [0], [1], [0, 0, 1, 1], [], []>} : vector<1x64xf32>, vector<64x128xf32>, vector<1x128xf32> -> vector<1x128xf32>
    %11 = vector.broadcast %10 : vector<1x128xf32> to vector<4x128xf32>
    %12 = arith.subf %2, %11 : vector<4x128xf32>
    %13 = arith.mulf %12, %12 : vector<4x128xf32>
    %cst_11 = arith.constant dense<0.000000e+00> : vector<128xf32>
    %14 = vector.multi_reduction <add>, %13, %cst_11 [0] : vector<4x128xf32> to vector<128xf32>
    %15 = vector.shape_cast %14 : vector<128xf32> to vector<1x128xf32>
    %c0_12 = arith.constant 0 : index
    %c0_13 = arith.constant 0 : index
    %16 = vector.load %arg5[%c0_12, %c0_13] : memref<128x64xf32, #tpu.memory_space<vmem>>, vector<128x64xf32>
    %cst_14 = arith.constant dense<0.000000e+00> : vector<1x64xf32>
    %17 = tpu.matmul %15, %16, %cst_14 {dimension_numbers = #tpu.dot_dimension_numbers<[1], [0], [0], [1], [0, 0, 1, 1], [], []>} : vector<1x128xf32>, vector<128x64xf32>, vector<1x64xf32> -> vector<1x64xf32>
    %cst_15 = arith.constant 1.250000e-01 : f32
    %18 = vector.broadcast %cst_15 : f32 to vector<1x64xf32>
    %19 = arith.mulf %17, %18 : vector<1x64xf32>
    %c0_16 = arith.constant 0 : index
    %c0_17 = arith.constant 0 : index
    %20 = vector.load %arg6[%c0_16, %c0_17] : memref<64x128xf32, #tpu.memory_space<vmem>>, vector<64x128xf32>
    %cst_18 = arith.constant dense<0.000000e+00> : vector<1x128xf32>
    %21 = tpu.matmul %19, %20, %cst_18 {dimension_numbers = #tpu.dot_dimension_numbers<[1], [0], [0], [1], [0, 0, 1, 1], [], []>} : vector<1x64xf32>, vector<64x128xf32>, vector<1x128xf32> -> vector<1x128xf32>
    %c0_19 = arith.constant 0 : index
    %c0_20 = arith.constant 0 : index
    %22 = vector.load %arg3[%c0_19, %c0_20] : memref<1x128xf32, #tpu.memory_space<vmem>>, vector<1x128xf32>
    %cst_21 = arith.constant 9.99999974E-6 : f32
    %23 = vector.broadcast %cst_21 : f32 to vector<1x128xf32>
    %24 = arith.addf %21, %23 : vector<1x128xf32>
    %25 = math.rsqrt %24 : vector<1x128xf32>
    %26 = arith.mulf %22, %25 : vector<1x128xf32>
    %27 = vector.broadcast %26 : vector<1x128xf32> to vector<4x128xf32>
    %28 = arith.mulf %12, %27 : vector<4x128xf32>
    %c0_22 = arith.constant 0 : index
    %c0_23 = arith.constant 0 : index
    %29 = vector.load %arg4[%c0_22, %c0_23] : memref<1x128xf32, #tpu.memory_space<vmem>>, vector<1x128xf32>
    %30 = vector.broadcast %29 : vector<1x128xf32> to vector<4x128xf32>
    %31 = arith.addf %28, %30 : vector<4x128xf32>
    %cst_24 = arith.constant 0.000000e+00 : f32
    %32 = vector.broadcast %cst_24 : f32 to vector<4x128xf32>
    %33 = arith.maximumf %31, %32 : vector<4x128xf32>
    %c0_25 = arith.constant 0 : index
    %c0_26 = arith.constant 0 : index
    %34 = vector.load %arg7[%c0_25, %c0_26] : memref<4x128xf32, #tpu.memory_space<vmem>>, vector<4x128xf32>
    tpu.vector_store %arg7[%c0_25, %c0_26], %33 {strides = array<i32>} : memref<4x128xf32, #tpu.memory_space<vmem>>, vector<4x128xf32>,
    return
  }
  func.func @transform_0(%arg0: i32) -> (i32, i32) {
    %c0_i32 = arith.constant 0 : i32
    %c0_i32_0 = arith.constant 0 : i32
    %c0_i32_1 = arith.constant 0 : i32
    return %c0_i32, %c0_i32_0 : i32, i32
  }
  func.func @transform_1(%arg0: i32) -> (i32, i32) {
    %c0_i32 = arith.constant 0 : i32
    %c0_i32_0 = arith.constant 0 : i32
    %c0_i32_1 = arith.constant 0 : i32
    return %c0_i32, %c0_i32_0 : i32, i32
  }
  func.func @transform_2(%arg0: i32) -> (i32, i32) {
    %c0_i32 = arith.constant 0 : i32
    %c0_i32_0 = arith.constant 0 : i32
    %c0_i32_1 = arith.constant 0 : i32
    return %c0_i32, %c0_i32_0 : i32, i32
  }
  func.func @transform_3(%arg0: i32) -> (i32, i32) {
    %c0_i32 = arith.constant 0 : i32
    %c0_i32_0 = arith.constant 0 : i32
    %c0_i32_1 = arith.constant 0 : i32
    return %c0_i32, %c0_i32_0 : i32, i32
  }
  func.func @transform_4(%arg0: i32) -> (i32, i32) {
    %c0_i32 = arith.constant 0 : i32
    %c0_i32_0 = arith.constant 0 : i32
    %c0_i32_1 = arith.constant 0 : i32
    return %c0_i32, %c0_i32_0 : i32, i32
  }
  func.func @transform_5(%arg0: i32) -> (i32, i32) {
    %c0_i32 = arith.constant 0 : i32
    %c0_i32_0 = arith.constant 0 : i32
    %c0_i32_1 = arith.constant 0 : i32
    return %c0_i32, %c0_i32_0 : i32, i32
  }
  func.func @transform_6(%arg0: i32) -> (i32, i32) {
    %c0_i32 = arith.constant 0 : i32
    %c0_i32_0 = arith.constant 0 : i32
    %c0_i32_1 = arith.constant 0 : i32
    return %c0_i32, %c0_i32_0 : i32, i32
  }
}

module attributes {stable_mosaic.version = 11 : i64} {
  func.func @conv_bn_relu_kernel(%arg0: i32, %arg1: memref<8x256xf32, #tpu.memory_space<vmem>>, %arg2: memref<256x128xf32, #tpu.memory_space<vmem>>, %arg3: memref<1x128xf32, #tpu.memory_space<vmem>>, %arg4: memref<1x128xf32, #tpu.memory_space<vmem>>, %arg5: memref<128x32xf32, #tpu.memory_space<vmem>>, %arg6: memref<32x128xf32, #tpu.memory_space<vmem>>, %arg7: memref<8x128xf32, #tpu.memory_space<vmem>>) attributes {dimension_semantics = [#tpu.dimension_semantics<arbitrary>], iteration_bounds = array<i64: 1>, scalar_prefetch = 0 : i64, scratch_operands = 0 : i64, tpu.core_type = #tpu.core_type<tc>, window_params = [{pipeline_mode = #tpu.pipeline_mode<synchronous>, transform_indices = @transform_0, window_bounds = array<i64: 8, 256>}, {pipeline_mode = #tpu.pipeline_mode<synchronous>, transform_indices = @transform_1, window_bounds = array<i64: 256, 128>}, {pipeline_mode = #tpu.pipeline_mode<synchronous>, transform_indices = @transform_2, window_bounds = array<i64: 1, 128>}, {pipeline_mode = #tpu.pipeline_mode<synchronous>, transform_indices = @transform_3, window_bounds = array<i64: 1, 128>}, {pipeline_mode = #tpu.pipeline_mode<synchronous>, transform_indices = @transform_4, window_bounds = array<i64: 128, 32>}, {pipeline_mode = #tpu.pipeline_mode<synchronous>, transform_indices = @transform_5, window_bounds = array<i64: 32, 128>}, {pipeline_mode = #tpu.pipeline_mode<synchronous>, transform_indices = @transform_6, window_bounds = array<i64: 8, 128>}]} {
    %c0 = arith.constant 0 : index
    %c0_0 = arith.constant 0 : index
    %0 = vector.load %arg1[%c0, %c0_0] : memref<8x256xf32, #tpu.memory_space<vmem>>, vector<8x256xf32>
    %c0_1 = arith.constant 0 : index
    %c0_2 = arith.constant 0 : index
    %1 = vector.load %arg2[%c0_1, %c0_2] : memref<256x128xf32, #tpu.memory_space<vmem>>, vector<256x128xf32>
    %cst = arith.constant dense<0.000000e+00> : vector<8x128xf32>
    %2 = tpu.matmul %0, %1, %cst {dimension_numbers = #tpu.dot_dimension_numbers<[1], [0], [0], [1], [0, 0, 1, 1], [], []>} : vector<8x256xf32>, vector<256x128xf32>, vector<8x128xf32> -> vector<8x128xf32>
    %cst_3 = arith.constant dense<0.000000e+00> : vector<128xf32>
    %3 = vector.multi_reduction <add>, %2, %cst_3 [0] : vector<8x128xf32> to vector<128xf32>
    %4 = vector.shape_cast %3 : vector<128xf32> to vector<1x128xf32>
    %c0_4 = arith.constant 0 : index
    %c0_5 = arith.constant 0 : index
    %5 = vector.load %arg5[%c0_4, %c0_5] : memref<128x32xf32, #tpu.memory_space<vmem>>, vector<128x32xf32>
    %cst_6 = arith.constant dense<0.000000e+00> : vector<1x32xf32>
    %6 = tpu.matmul %4, %5, %cst_6 {dimension_numbers = #tpu.dot_dimension_numbers<[1], [0], [0], [1], [0, 0, 1, 1], [], []>} : vector<1x128xf32>, vector<128x32xf32>, vector<1x32xf32> -> vector<1x32xf32>
    %cst_7 = arith.constant 3.125000e-02 : f32
    %7 = vector.broadcast %cst_7 : f32 to vector<1x32xf32>
    %8 = arith.mulf %6, %7 : vector<1x32xf32>
    %c0_8 = arith.constant 0 : index
    %c0_9 = arith.constant 0 : index
    %9 = vector.load %arg6[%c0_8, %c0_9] : memref<32x128xf32, #tpu.memory_space<vmem>>, vector<32x128xf32>
    %cst_10 = arith.constant dense<0.000000e+00> : vector<1x128xf32>
    %10 = tpu.matmul %8, %9, %cst_10 {dimension_numbers = #tpu.dot_dimension_numbers<[1], [0], [0], [1], [0, 0, 1, 1], [], []>} : vector<1x32xf32>, vector<32x128xf32>, vector<1x128xf32> -> vector<1x128xf32>
    %11 = vector.broadcast %10 : vector<1x128xf32> to vector<8x128xf32>
    %12 = arith.subf %2, %11 : vector<8x128xf32>
    %13 = arith.mulf %12, %12 : vector<8x128xf32>
    %cst_11 = arith.constant dense<0.000000e+00> : vector<128xf32>
    %14 = vector.multi_reduction <add>, %13, %cst_11 [0] : vector<8x128xf32> to vector<128xf32>
    %15 = vector.shape_cast %14 : vector<128xf32> to vector<1x128xf32>
    %c0_12 = arith.constant 0 : index
    %c0_13 = arith.constant 0 : index
    %16 = vector.load %arg5[%c0_12, %c0_13] : memref<128x32xf32, #tpu.memory_space<vmem>>, vector<128x32xf32>
    %cst_14 = arith.constant dense<0.000000e+00> : vector<1x32xf32>
    %17 = tpu.matmul %15, %16, %cst_14 {dimension_numbers = #tpu.dot_dimension_numbers<[1], [0], [0], [1], [0, 0, 1, 1], [], []>} : vector<1x128xf32>, vector<128x32xf32>, vector<1x32xf32> -> vector<1x32xf32>
    %cst_15 = arith.constant 3.125000e-02 : f32
    %18 = vector.broadcast %cst_15 : f32 to vector<1x32xf32>
    %19 = arith.mulf %17, %18 : vector<1x32xf32>
    %c0_16 = arith.constant 0 : index
    %c0_17 = arith.constant 0 : index
    %20 = vector.load %arg6[%c0_16, %c0_17] : memref<32x128xf32, #tpu.memory_space<vmem>>, vector<32x128xf32>
    %cst_18 = arith.constant dense<0.000000e+00> : vector<1x128xf32>
    %21 = tpu.matmul %19, %20, %cst_18 {dimension_numbers = #tpu.dot_dimension_numbers<[1], [0], [0], [1], [0, 0, 1, 1], [], []>} : vector<1x32xf32>, vector<32x128xf32>, vector<1x128xf32> -> vector<1x128xf32>
    %c0_19 = arith.constant 0 : index
    %c0_20 = arith.constant 0 : index
    %22 = vector.load %arg3[%c0_19, %c0_20] : memref<1x128xf32, #tpu.memory_space<vmem>>, vector<1x128xf32>
    %cst_21 = arith.constant 9.99999974E-6 : f32
    %23 = vector.broadcast %cst_21 : f32 to vector<1x128xf32>
    %24 = arith.addf %21, %23 : vector<1x128xf32>
    %25 = math.rsqrt %24 : vector<1x128xf32>
    %26 = arith.mulf %22, %25 : vector<1x128xf32>
    %27 = vector.broadcast %26 : vector<1x128xf32> to vector<8x128xf32>
    %28 = arith.mulf %12, %27 : vector<8x128xf32>
    %c0_22 = arith.constant 0 : index
    %c0_23 = arith.constant 0 : index
    %29 = vector.load %arg4[%c0_22, %c0_23] : memref<1x128xf32, #tpu.memory_space<vmem>>, vector<1x128xf32>
    %30 = vector.broadcast %29 : vector<1x128xf32> to vector<8x128xf32>
    %31 = arith.addf %28, %30 : vector<8x128xf32>
    %cst_24 = arith.constant 0.000000e+00 : f32
    %32 = vector.broadcast %cst_24 : f32 to vector<8x128xf32>
    %33 = arith.maximumf %31, %32 : vector<8x128xf32>
    %c0_25 = arith.constant 0 : index
    %c0_26 = arith.constant 0 : index
    %34 = vector.load %arg7[%c0_25, %c0_26] : memref<8x128xf32, #tpu.memory_space<vmem>>, vector<8x128xf32>
    tpu.vector_store %arg7[%c0_25, %c0_26], %33 {strides = array<i32>} : memref<8x128xf32, #tpu.memory_space<vmem>>, vector<8x128xf32>,
    return
  }
  func.func @transform_0(%arg0: i32) -> (i32, i32) {
    %c0_i32 = arith.constant 0 : i32
    %c0_i32_0 = arith.constant 0 : i32
    %c0_i32_1 = arith.constant 0 : i32
    return %c0_i32, %c0_i32_0 : i32, i32
  }
  func.func @transform_1(%arg0: i32) -> (i32, i32) {
    %c0_i32 = arith.constant 0 : i32
    %c0_i32_0 = arith.constant 0 : i32
    %c0_i32_1 = arith.constant 0 : i32
    return %c0_i32, %c0_i32_0 : i32, i32
  }
  func.func @transform_2(%arg0: i32) -> (i32, i32) {
    %c0_i32 = arith.constant 0 : i32
    %c0_i32_0 = arith.constant 0 : i32
    %c0_i32_1 = arith.constant 0 : i32
    return %c0_i32, %c0_i32_0 : i32, i32
  }
  func.func @transform_3(%arg0: i32) -> (i32, i32) {
    %c0_i32 = arith.constant 0 : i32
    %c0_i32_0 = arith.constant 0 : i32
    %c0_i32_1 = arith.constant 0 : i32
    return %c0_i32, %c0_i32_0 : i32, i32
  }
  func.func @transform_4(%arg0: i32) -> (i32, i32) {
    %c0_i32 = arith.constant 0 : i32
    %c0_i32_0 = arith.constant 0 : i32
    %c0_i32_1 = arith.constant 0 : i32
    return %c0_i32, %c0_i32_0 : i32, i32
  }
  func.func @transform_5(%arg0: i32) -> (i32, i32) {
    %c0_i32 = arith.constant 0 : i32
    %c0_i32_0 = arith.constant 0 : i32
    %c0_i32_1 = arith.constant 0 : i32
    return %c0_i32, %c0_i32_0 : i32, i32
  }
  func.func @transform_6(%arg0: i32) -> (i32, i32) {
    %c0_i32 = arith.constant 0 : i32
    %c0_i32_0 = arith.constant 0 : i32
    %c0_i32_1 = arith.constant 0 : i32
    return %c0_i32, %c0_i32_0 : i32, i32
  }
}

module attributes {stable_mosaic.version = 11 : i64} {
  func.func @latent_head_kernel(%arg0: i32, %arg1: memref<2x256xf32, #tpu.memory_space<vmem>>, %arg2: memref<256x64xf32, #tpu.memory_space<vmem>>, %arg3: memref<1x64xf32, #tpu.memory_space<vmem>>, %arg4: memref<2x32xf32, #tpu.memory_space<vmem>>, %arg5: memref<2x128xf32, #tpu.memory_space<vmem>>) attributes {dimension_semantics = [#tpu.dimension_semantics<arbitrary>], iteration_bounds = array<i64: 1>, scalar_prefetch = 0 : i64, scratch_operands = 0 : i64, tpu.core_type = #tpu.core_type<tc>, window_params = [{pipeline_mode = #tpu.pipeline_mode<synchronous>, transform_indices = @transform_0, window_bounds = array<i64: 2, 256>}, {pipeline_mode = #tpu.pipeline_mode<synchronous>, transform_indices = @transform_1, window_bounds = array<i64: 256, 64>}, {pipeline_mode = #tpu.pipeline_mode<synchronous>, transform_indices = @transform_2, window_bounds = array<i64: 1, 64>}, {pipeline_mode = #tpu.pipeline_mode<synchronous>, transform_indices = @transform_3, window_bounds = array<i64: 2, 32>}, {pipeline_mode = #tpu.pipeline_mode<synchronous>, transform_indices = @transform_4, window_bounds = array<i64: 2, 128>}]} {
    %c0 = arith.constant 0 : index
    %c0_0 = arith.constant 0 : index
    %0 = vector.load %arg1[%c0, %c0_0] : memref<2x256xf32, #tpu.memory_space<vmem>>, vector<2x256xf32>
    %c0_1 = arith.constant 0 : index
    %c0_2 = arith.constant 0 : index
    %1 = vector.load %arg2[%c0_1, %c0_2] : memref<256x64xf32, #tpu.memory_space<vmem>>, vector<256x64xf32>
    %cst = arith.constant dense<0.000000e+00> : vector<2x64xf32>
    %2 = tpu.matmul %0, %1, %cst {dimension_numbers = #tpu.dot_dimension_numbers<[1], [0], [0], [1], [0, 0, 1, 1], [], []>} : vector<2x256xf32>, vector<256x64xf32>, vector<2x64xf32> -> vector<2x64xf32>
    %c0_3 = arith.constant 0 : index
    %c0_4 = arith.constant 0 : index
    %3 = vector.load %arg3[%c0_3, %c0_4] : memref<1x64xf32, #tpu.memory_space<vmem>>, vector<1x64xf32>
    %4 = vector.broadcast %3 : vector<1x64xf32> to vector<2x64xf32>
    %5 = arith.addf %2, %4 : vector<2x64xf32>
    %6 = vector.extract_strided_slice %5 {offsets = [0, 0], sizes = [2, 32], strides = [1, 1]} : vector<2x64xf32> to vector<2x32xf32>
    %7 = vector.extract_strided_slice %5 {offsets = [0, 32], sizes = [2, 32], strides = [1, 1]} : vector<2x64xf32> to vector<2x32xf32>
    %c0_5 = arith.constant 0 : index
    %c0_6 = arith.constant 0 : index
    %8 = vector.load %arg4[%c0_5, %c0_6] : memref<2x32xf32, #tpu.memory_space<vmem>>, vector<2x32xf32>
    %cst_7 = arith.constant 5.000000e-01 : f32
    %9 = vector.broadcast %cst_7 : f32 to vector<2x32xf32>
    %10 = arith.mulf %7, %9 : vector<2x32xf32>
    %11 = math.exp %10 : vector<2x32xf32>
    %12 = arith.mulf %8, %11 : vector<2x32xf32>
    %13 = arith.addf %6, %12 : vector<2x32xf32>
    %cst_8 = arith.constant 0.000000e+00 : f32
    %14 = vector.broadcast %cst_8 : f32 to vector<2x32xf32>
    %15 = tpu.concatenate %5, %13, %14 in 1 : vector<2x64xf32>, vector<2x32xf32>, vector<2x32xf32> -> vector<2x128xf32>
    %c0_9 = arith.constant 0 : index
    %c0_10 = arith.constant 0 : index
    %16 = vector.load %arg5[%c0_9, %c0_10] : memref<2x128xf32, #tpu.memory_space<vmem>>, vector<2x128xf32>
    tpu.vector_store %arg5[%c0_9, %c0_10], %15 {strides = array<i32>} : memref<2x128xf32, #tpu.memory_space<vmem>>, vector<2x128xf32>,
    return
  }
  func.func @transform_0(%arg0: i32) -> (i32, i32) {
    %c0_i32 = arith.constant 0 : i32
    %c0_i32_0 = arith.constant 0 : i32
    %c0_i32_1 = arith.constant 0 : i32
    return %c0_i32, %c0_i32_0 : i32, i32
  }
  func.func @transform_1(%arg0: i32) -> (i32, i32) {
    %c0_i32 = arith.constant 0 : i32
    %c0_i32_0 = arith.constant 0 : i32
    %c0_i32_1 = arith.constant 0 : i32
    return %c0_i32, %c0_i32_0 : i32, i32
  }
  func.func @transform_2(%arg0: i32) -> (i32, i32) {
    %c0_i32 = arith.constant 0 : i32
    %c0_i32_0 = arith.constant 0 : i32
    %c0_i32_1 = arith.constant 0 : i32
    return %c0_i32, %c0_i32_0 : i32, i32
  }
  func.func @transform_3(%arg0: i32) -> (i32, i32) {
    %c0_i32 = arith.constant 0 : i32
    %c0_i32_0 = arith.constant 0 : i32
    %c0_i32_1 = arith.constant 0 : i32
    return %c0_i32, %c0_i32_0 : i32, i32
  }
  func.func @transform_4(%arg0: i32) -> (i32, i32) {
    %c0_i32 = arith.constant 0 : i32
    %c0_i32_0 = arith.constant 0 : i32
    %c0_i32_1 = arith.constant 0 : i32
    return %c0_i32, %c0_i32_0 : i32, i32
  }
}

</mosaic_0001>

<bundles_post_ra>
// kernel: encoder_forward.6
= control target key start
LH: loop header
LB: loop body
LE: loop exit
PB: predicated region body
PF: predicated region fallthrough
CT: control target
= control target key end

     0   :  { %v795_v3 = vmov 0.0|0.0   ;;  %vm796_vm0 = vmmov 0   ;;  %vm129_vm1 = vcmask 1043456   ;;  %vm232_vm2 = vcmask 523264   ;;  %s1061_s1 = inlined_call_operand.vmem [shape: f32[256,128], index: 1, kind: input, shape index: {}]   ;;  %s1062_s0 = inlined_call_operand.vmem [shape: f32[4,256], index: 0, kind: input, shape index: {}]   ;;  %s1063_s4 = inlined_call_operand.vmem [shape: f32[128,64], index: 4, kind: input, shape index: {}]   ;;  %s1064_s5 = inlined_call_operand.vmem [shape: f32[64,128], index: 5, kind: input, shape index: {}]   ;;  %s1065_s2 = inlined_call_operand.vmem [shape: f32[1,128], index: 2, kind: input, shape index: {}]   ;;  %s1066_s3 = inlined_call_operand.vmem [shape: f32[1,128], index: 3, kind: input, shape index: {}]   ;;  %s1067_s6 = inlined_call_operand.vmem [shape: f32[4,128], index: 6, kind: output, shape index: {}]  }
   0x1   :  { %v40_v0 = vld [vmem:[%s1061_s1 + $0x80] sm:$0xff]  ;;  %v41_v1 = vld [vmem:[%s1061_s1 + $0x88] sm:$0xff]  ;;  %717 = vmatprep.subr.bf16.mxu1 %v795_v3  ;;  %v42_v6 = vld [vmem:[%s1061_s1 + $0x90] sm:$0xff] }
   0x2   :  { %v24_v2 = vld [vmem:[%s1061_s1] sm:$0xff]  ;;  %v685_v4 = vpack.c.bf16 %v41_v1, %v40_v0  ;;  %v25_v5 = vld [vmem:[%s1061_s1 + $0x8] sm:$0xff]  ;;  %v43_v7 = vld [vmem:[%s1061_s1 + $0x98] sm:$0xff] }
   0x3   :  { %v687_v8 = vpack.c.bf16 %v25_v5, %v24_v2  ;;  %v689_v9 = vpack.c.bf16 %v43_v7, %v42_v6  ;;  %v26_v10 = vld [vmem:[%s1061_s1 + $0x10] sm:$0xff]  ;;  %v27_v11 = vld [vmem:[%s1061_s1 + $0x18] sm:$0xff]  ;;  %v44_v12 = vld [vmem:[%s1061_s1 + $0xa0] sm:$0xff] }
   0x4   :  { %686 = vmatprep.subr.bf16.mxu0 %v685_v4  ;;  %v45_v13 = vld [vmem:[%s1061_s1 + $0xa8] sm:$0xff]  ;;  %v691_v14 = vpack.c.bf16 %v27_v11, %v26_v10  ;;  %v28_v16 = vld [vmem:[%s1061_s1 + $0x20] sm:$0xff]  ;;  %v46_v18 = vld [vmem:[%s1061_s1 + $0xb0] sm:$0xff] }
   0x5   :  { %688 = vmatpush3.bf16.msra.mxu0 %v687_v8  ;;  %v693_v15 = vpack.c.bf16 %v45_v13, %v44_v12  ;;  %v29_v17 = vld [vmem:[%s1061_s1 + $0x28] sm:$0xff]  ;;  %v47_v19 = vld [vmem:[%s1061_s1 + $0xb8] sm:$0xff]  ;;  %v30_v22 = vld [vmem:[%s1061_s1 + $0x30] sm:$0xff]  ;;  %v797_v12 = vmov 0.0  }
   0x6   :  { %690 = vmatprep.subr.bf16.mxu0 %v689_v9  ;;  %v695_v20 = vpack.c.bf16 %v29_v17, %v28_v16  ;;  %v697_v21 = vpack.c.bf16 %v47_v19, %v46_v18  ;;  %v31_v23 = vld [vmem:[%s1061_s1 + $0x38] sm:$0xff]  ;;  %v48_v24 = vld [vmem:[%s1061_s1 + $0xc0] sm:$0xff]  ;;  %v49_v25 = vld [vmem:[%s1061_s1 + $0xc8] sm:$0xff]  ;;  %609 = vmatprep.mubr.msk.f32.mxu1 %vm796_vm0, %v797_v12 }
   0x7   :  { %v23_v26 = vld [vmem:[%s1062_s0] sm:$0xff]  ;;  %v138_v29 = vld [vmem:[%s1063_s4 + $0x8] sm:$0xff]  ;;  %v139_v30 = vld [vmem:[%s1063_s4 + $0x10] sm:$0xff]  ;;  %v699_v31 = vpack.c.bf16 %v31_v23, %v30_v22  ;;  %v701_v34 = vpack.c.bf16 %v49_v25, %v48_v24 }
   0x8   :  { %v57_v27 = vcombine.high %v23_v26, %v23_v26  ;;  %v137_v28 = vld [vmem:[%s1063_s4] sm:$0xff]  ;;  %v140_v33 = vld [vmem:[%s1063_s4 + $0x18] sm:$0xff]  ;;  %v33_v36 = vld [vmem:[%s1061_s1 + $0x48] sm:$0xff] }
   0x9   :  { %692 = vmatpush3.bf16.msra.mxu0 %v691_v14  ;;  %v900_v32 = vpack.c.bf16 %v138_v29, %v137_v28  ;;  %v32_v35 = vld [vmem:[%s1061_s1 + $0x40] sm:$0xff]  ;;  %v50_v37 = vld [vmem:[%s1061_s1 + $0xd0] sm:$0xff]  ;;  %v51_v38 = vld [vmem:[%s1061_s1 + $0xd8] sm:$0xff]  ;;  %v918_v39 = vpack.c.bf16 %v140_v33, %v139_v30 }
   0xa   :  { %694 = vmatprep.subr.bf16.mxu0 %v693_v15  ;;  %123 = vmatprep.mubr.f32.mxu0 %v57_v27  ;;  %v141_v40 = vld [vmem:[%s1063_s4 + $0x20] sm:$0xff]  ;;  %v142_v41 = vld [vmem:[%s1063_s4 + $0x28] sm:$0xff]  ;;  %v703_v42 = vpack.c.bf16 %v33_v36, %v32_v35  ;;  %v705_v43 = vpack.c.bf16 %v51_v38, %v50_v37  ;;  %v34_v44 = vld [vmem:[%s1061_s1 + $0x50] sm:$0xff]  ;;  %v306_v38 = vlaneseq }
   0xb   :  { %719 = vmatpush3.bf16.msra.mxu1 %v900_v32  ;;  %v35_v45 = vld [vmem:[%s1061_s1 + $0x58] sm:$0xff]  ;;  %v52_v46 = vld [vmem:[%s1061_s1 + $0xe0] sm:$0xff]  ;;  %v53_v47 = vld [vmem:[%s1061_s1 + $0xe8] sm:$0xff]  ;;  %v940_v48 = vpack.c.bf16 %v142_v41, %v141_v40 }
   0xc   :  { %720 = vmatprep.subr.bf16.mxu1 %v795_v3  ;;  %v143_v49 = vld [vmem:[%s1063_s4 + $0x30] sm:$0xff]  ;;  %v144_v50 = vld [vmem:[%s1063_s4 + $0x38] sm:$0xff]  ;;  %v707_v51 = vpack.c.bf16 %v35_v45, %v34_v44  ;;  %v709_v52 = vpack.c.bf16 %v53_v47, %v52_v46  ;;  %v36_v53 = vld [vmem:[%s1061_s1 + $0x60] sm:$0xff] }
   0xd   :  { %696 = vmatpush3.bf16.msra.mxu0 %v695_v20  ;;  %v37_v54 = vld [vmem:[%s1061_s1 + $0x68] sm:$0xff]  ;;  %v54_v55 = vld [vmem:[%s1061_s1 + $0xf0] sm:$0xff]  ;;  %v55_v56 = vld [vmem:[%s1061_s1 + $0xf8] sm:$0xff]  ;;  %v962_v57 = vpack.c.bf16 %v144_v50, %v143_v49 }
   0xe   :  { %698 = vmatprep.subr.bf16.mxu0 %v697_v21  ;;  %v711_v58 = vpack.c.bf16 %v37_v54, %v36_v53  ;;  %v713_v59 = vpack.c.bf16 %v55_v56, %v54_v55  ;;  %v38_v60 = vld [vmem:[%s1061_s1 + $0x70] sm:$0xff]  ;;  %v39_v61 = vld [vmem:[%s1061_s1 + $0x78] sm:$0xff]  ;;  %v145_v63 = vld [vmem:[%s1063_s4 + $0x40] sm:$0xff] }
   0xf   :  { %722 = vmatpush3.bf16.msra.mxu1 %v918_v39  ;;  %v715_v62 = vpack.c.bf16 %v39_v61, %v38_v60  ;;  %v146_v0 = vld [vmem:[%s1063_s4 + $0x48] sm:$0xff]  ;;  %v147_v2 = vld [vmem:[%s1063_s4 + $0x50] sm:$0xff]  ;;  %v148_v4 = vld [vmem:[%s1063_s4 + $0x58] sm:$0xff] }
  0x10   :  { %723 = vmatprep.subr.bf16.mxu1 %v795_v3  ;;  %v730_v1 = vpack.c.bf16 %v146_v0, %v145_v63  ;;  %v733_v5 = vpack.c.bf16 %v148_v4, %v147_v2  ;;  %v149_v6 = vld [vmem:[%s1063_s4 + $0x60] sm:$0xff]  ;;  %v150_v7 = vld [vmem:[%s1063_s4 + $0x68] sm:$0xff]  ;;  %v151_v9 = vld [vmem:[%s1063_s4 + $0x70] sm:$0xff] }
  0x11   :  { %700 = vmatpush3.bf16.msra.mxu0 %v699_v31  ;;  %v736_v8 = vpack.c.bf16 %v150_v7, %v149_v6  ;;  %v152_v10 = vld [vmem:[%s1063_s4 + $0x78] sm:$0xff]  ;;  %v224_v13 = vld [vmem:[%s1064_s5] sm:$0xff]  ;;  %v225_v14 = vld [vmem:[%s1064_s5 + $0x8] sm:$0xff] }
  0x12   :  { %702 = vmatprep.subr.bf16.mxu0 %v701_v34  ;;  %v739_v11 = vpack.c.bf16 %v152_v10, %v151_v9  ;;  %v226_v15 = vld [vmem:[%s1064_s5 + $0x10] sm:$0xff]  ;;  %v742_v16 = vpack.c.bf16 %v225_v14, %v224_v13  ;;  %v227_v17 = vld [vmem:[%s1064_s5 + $0x18] sm:$0xff]  ;;  %v228_v19 = vld [vmem:[%s1064_s5 + $0x20] sm:$0xff] }
  0x13   :  { %725 = vmatpush3.bf16.msra.mxu1 %v940_v48  ;;  %v745_v18 = vpack.c.bf16 %v227_v17, %v226_v15  ;;  %v229_v20 = vld [vmem:[%s1064_s5 + $0x28] sm:$0xff]  ;;  %v231_v33 = vld [vmem:[%s1064_s5 + $0x38] sm:$0xff] }
  0x14   :  { %726 = vmatprep.subr.bf16.mxu1 %v795_v3  ;;  %v748_v21 = vpack.c.bf16 %v229_v20, %v228_v19 }
  0x15   :  { %704 = vmatpush3.bf16.msra.mxu0 %v703_v42 }
  0x16   :  { %706 = vmatprep.subr.bf16.mxu0 %v705_v43 }
  0x17   :  { %728 = vmatpush3.bf16.msra.mxu1 %v962_v57 }
  0x18   :  { %729 = vmatprep.subr.bf16.mxu1 %v795_v3 }
  0x19   :  { %708 = vmatpush3.bf16.msra.mxu0 %v707_v51 }
  0x1a   :  { %710 = vmatprep.subr.bf16.mxu0 %v709_v52 }
  0x1b   :  { %731 = vmatpush3.bf16.msra.mxu1 %v730_v1 }
  0x1c   :  { %732 = vmatprep.subr.bf16.mxu1 %v795_v3 }
  0x1d   :  { %712 = vmatpush3.bf16.msra.mxu0 %v711_v58  ;;  %v390_v58 = vld [vmem:[%s1065_s2] sm:$0x1] }
  0x1e   :  { %714 = vmatprep.subr.bf16.mxu0 %v713_v59 }
  0x1f   :  { %734 = vmatpush3.bf16.msra.mxu1 %v733_v5 }
  0x20   :  { %735 = vmatprep.subr.bf16.mxu1 %v795_v3 }
  0x21   :  { %716 = vmatpush3.bf16.msra.mxu0 %v715_v62  ;;  %v489_v62 = vld [vmem:[%s1066_s3] ss:$0 sm:$0xff] }
  0x22   :  { %741 = vmatprep.subr.bf16.mxu0 %v795_v3 }
  0x23   :  { %737 = vmatpush3.bf16.msra.mxu1 %v736_v8 }
  0x24   :  { %124 = vmatmul.mubr.f32.vlgmr.msra.gmra.mrb[0].mxu0 %v23_v26  ;;  %738 = vmatprep.subr.bf16.mxu1 %v795_v3 }
  0x25   :  { %628 = vmatprep.mubr.msk.f32.mxu0 %vm796_vm0, %v797_v12  ;;  %743 = vmatpush3.bf16.msra.mxu0 %v742_v16 }
  0x26   :  { %744 = vmatprep.subr.bf16.mxu0 %v795_v3 }
  0x27   :  { %740 = vmatpush3.bf16.msra.mxu1 %v739_v11 }
  0x28   :  { %753 = vmatprep.subr.bf16.mxu1 %v795_v3 }
  0x29   :  { %746 = vmatpush3.bf16.msra.mxu0 %v745_v18 }
  0x2a   :  { %747 = vmatprep.subr.bf16.mxu0 %v795_v3 }
  0x2d   :  { %749 = vmatpush3.bf16.msra.mxu0 %v748_v21 }
  0x2e   :  { %750 = vmatprep.subr.bf16.mxu0 %v795_v3 }
  0xf7   :  { %v522_v22 = vpop.f32.mrb[0].mxu0 }
  0xf8   :  { %v523_v23 = vpop.f32.mrb[1].mxu0 }
  0xf9   :  { %v524_v24 = vadd.f32 %v523_v23, %v522_v22 }
  0xfb   :  { %v130_v25 = vsel %vm129_vm1, %v524_v24, 0.0 }
  0xfc   :  { %v131_v26 = vrot.slane %v130_v25, 4 }
  0xfe   :  { %v132_v27 = vadd.f32 %v131_v26, %v130_v25 }
 0x100   :  { %v133_v28 = vrot.slane %v132_v27, 2 }
 0x102   :  { %v134_v29 = vadd.f32 %v133_v28, %v132_v27 }
 0x104   :  { %v135_v30 = vrot.slane %v134_v29, 1 }
 0x106   :  { %v136_v31 = vadd.f32 %v135_v30, %v134_v29 }
 0x108   :  { %610 = vmatmul.mubr.f32.vlgmr.msra.gmra.mrb[0].mxu1 %v136_v31 }
 0x109   :  { %755 = vmatpush3.bf16.msra.mxu1 %v900_v32  ;;  %663 = vmatprep.mubr.msk.f32.mxu1 %vm796_vm0, %v797_v12  ;;  %v230_v32 = vld [vmem:[%s1064_s5 + $0x30] sm:$0xff] }
 0x10a   :  { %756 = vmatprep.subr.bf16.mxu1 %v795_v3  ;;  %v751_v34 = vpack.c.bf16 %v231_v33, %v230_v32 }
 0x10c   :  { %752 = vmatpush3.bf16.msra.mxu0 %v751_v34 }
 0x10d   :  { %758 = vmatpush3.bf16.msra.mxu1 %v918_v39  ;;  %777 = vmatprep.subr.bf16.mxu0 %v795_v3  ;;  %v307_v39 = vshrl.u32 %v306_v38, 7 }
 0x10e   :  { %759 = vmatprep.subr.bf16.mxu1 %v795_v3 }
 0x10f   :  { %v308_v40 = vsub.s32 0, %v307_v39 }
 0x111   :  { %761 = vmatpush3.bf16.msra.mxu1 %v940_v48 }
 0x112   :  { %762 = vmatprep.subr.bf16.mxu1 %v795_v3 }
 0x115   :  { %764 = vmatpush3.bf16.msra.mxu1 %v962_v57 }
 0x116   :  { %765 = vmatprep.subr.bf16.mxu1 %v795_v3 }
 0x119   :  { %767 = vmatpush3.bf16.msra.mxu1 %v730_v1 }
 0x11a   :  { %768 = vmatprep.subr.bf16.mxu1 %v795_v3 }
 0x11d   :  { %770 = vmatpush3.bf16.msra.mxu1 %v733_v5 }
 0x11e   :  { %771 = vmatprep.subr.bf16.mxu1 %v795_v3 }
 0x121   :  { %773 = vmatpush3.bf16.msra.mxu1 %v736_v8 }
 0x122   :  { %774 = vmatprep.subr.bf16.mxu1 %v795_v3 }
 0x125   :  { %776 = vmatpush3.bf16.msra.mxu1 %v739_v11 }
 0x1db   :  { %v219_v35 = vpop.f32.mrb[0].mxu1 }
 0x1dc   :  { %v223_v36 = vmul.f32 0.125, %v219_v35  ;;  %v611_v37 = vpop.f32.mrb[1].mxu1 }
 0x1de   :  { %629 = vmatmul.mubr.msk.f32.vlgmr.msra.gmra.mrb[2].mxu0 %vm232_vm2, %v223_v36 }
 0x1df   :  { %779 = vmatpush3.bf16.msra.mxu0 %v742_v16  ;;  %682 = vmatprep.mubr.msk.f32.mxu0 %vm796_vm0, %v797_v12 }
 0x1e0   :  { %780 = vmatprep.subr.bf16.mxu0 %v795_v3 }
 0x1e3   :  { %782 = vmatpush3.bf16.msra.mxu0 %v745_v18 }
 0x1e4   :  { %783 = vmatprep.subr.bf16.mxu0 %v795_v3 }
 0x1e7   :  { %785 = vmatpush3.bf16.msra.mxu0 %v748_v21 }
 0x1e8   :  { %786 = vmatprep.subr.bf16.mxu0 %v795_v3 }
 0x1eb   :  { %788 = vmatpush3.bf16.msra.mxu0 %v751_v34 }
 0x2b1   :  { %v302_v41 = vpop.f32.mrb[2].mxu0 }
 0x2b2   :  { %v309_v42 = vrot.slane %v302_v41, %v308_v40  ;;  %v630_v43 = vpop.f32.mrb[3].mxu0 }
 0x2b4   :  { %v310_v44 = vsub.f32 %v524_v24, %v309_v42 }
 0x2b6   :  { %v311_v45 = vmul.f32 %v310_v44, %v310_v44 }
 0x2b8   :  { %v312_v46 = vsel %vm129_vm1, %v311_v45, 0.0 }
 0x2b9   :  { %v313_v47 = vrot.slane %v312_v46, 4 }
 0x2bb   :  { %v314_v48 = vadd.f32 %v313_v47, %v312_v46 }
 0x2bd   :  { %v315_v49 = vrot.slane %v314_v48, 2 }
 0x2bf   :  { %v316_v50 = vadd.f32 %v315_v49, %v314_v48 }
 0x2c1   :  { %v317_v51 = vrot.slane %v316_v50, 1 }
 0x2c3   :  { %v318_v52 = vadd.f32 %v317_v51, %v316_v50 }
 0x2c5   :  { %664 = vmatmul.mubr.f32.vlgmr.msra.gmra.mrb[2].mxu1 %v318_v52 }
 0x398   :  { %v385_v53 = vpop.f32.mrb[2].mxu1 }
 0x399   :  { %v389_v3 = vmul.f32 0.125, %v385_v53  ;;  %v665_v54 = vpop.f32.mrb[3].mxu1 }
 0x39b   :  { %683 = vmatmul.mubr.msk.f32.vlgmr.msra.gmra.mrb[4].mxu0 %vm232_vm2, %v389_v3 }
 0x46e   :  { %v460_v55 = vpop.f32.mrb[4].mxu0 }
 0x46f   :  { %v461_v56 = vadd.f32 1e-05, %v460_v55  ;;  %v684_v57 = vpop.f32.mrb[5].mxu0 }
 0x471   :  { %793 = vrsqrt.f32 %v461_v56 }
 0x47b   :  { %v794_v59 = vpop.eup %793 }
 0x47c   :  { %v465_v60 = vmul.f32 %v794_v59, %v390_v58 }
 0x47e   :  { %v470_v61 = vrot.slane %v465_v60, %v308_v40 }
 0x480   :  { %v472_v63 = vmul.f32 %v470_v61, %v310_v44 }
 0x482   :  { %v480_v0 = vadd.f32 %v489_v62, %v472_v63 }
 0x484   :  { %v481_v1 = vmax.f32 %v480_v0, 0.0 }
 0x486   :  { %482 = vst [vmem:[%s1067_s6] sm:$0xf] %v481_v1 }

// kernel: encoder_forward.4
= control target key start
LH: loop header
LB: loop body
LE: loop exit
PB: predicated region body
PF: predicated region fallthrough
CT: control target
= control target key end

     0   :  { %v744_v3 = vmov 0.0|0.0   ;;  %vm745_vm0 = vmmov 0   ;;  %v746_v51 = vmov 0.0   ;;  %vm212_vm1 = vcmask 130048   ;;  %s942_s1 = inlined_call_operand.vmem [shape: f32[128,128], index: 1, kind: input, shape index: {}]   ;;  %s943_s0 = inlined_call_operand.vmem [shape: f32[16,128], index: 0, kind: input, shape index: {}]   ;;  %s944_s4 = inlined_call_operand.vmem [shape: f32[128,16], index: 4, kind: input, shape index: {}]   ;;  %s945_s5 = inlined_call_operand.vmem [shape: f32[16,128], index: 5, kind: input, shape index: {}]   ;;  %s946_s2 = inlined_call_operand.vmem [shape: f32[1,128], index: 2, kind: input, shape index: {}]   ;;  %s947_s3 = inlined_call_operand.vmem [shape: f32[1,128], index: 3, kind: input, shape index: {}]   ;;  %s948_s6 = inlined_call_operand.vmem [shape: f32[16,128], index: 6, kind: output, shape index: {}]  }
   0x1   :  { %v25_v0 = vld [vmem:[%s942_s1] sm:$0xff]  ;;  %v26_v1 = vld [vmem:[%s942_s1 + $0x8] sm:$0xff]  ;;  %v27_v2 = vld [vmem:[%s942_s1 + $0x10] sm:$0xff]  ;;  %685 = vmatprep.subr.bf16.mxu1 %v744_v3  ;;  %601 = vmatprep.mubr.msk.f32.mxu1 %vm745_vm0, %v746_v51 }
   0x2   :  { %v653_v4 = vpack.c.bf16 %v26_v1, %v25_v0  ;;  %v28_v5 = vld [vmem:[%s942_s1 + $0x18] sm:$0xff]  ;;  %v29_v7 = vld [vmem:[%s942_s1 + $0x20] sm:$0xff]  ;;  %v30_v8 = vld [vmem:[%s942_s1 + $0x28] sm:$0xff] }
   0x3   :  { %v657_v6 = vpack.c.bf16 %v28_v5, %v27_v2  ;;  %v661_v9 = vpack.c.bf16 %v30_v8, %v29_v7  ;;  %v31_v10 = vld [vmem:[%s942_s1 + $0x30] sm:$0xff]  ;;  %v32_v11 = vld [vmem:[%s942_s1 + $0x38] sm:$0xff]  ;;  %v23_v12 = vld [vmem:[%s943_s0] sm:$0xff] }
   0x4   :  { %654 = vmatprep.subr.bf16.mxu0 %v653_v4  ;;  %566 = vmatprep.mubr.f32.mxu0 %v23_v12  ;;  %v123_v13 = vld [vmem:[%s944_s4] sm:$0xff]  ;;  %v124_v14 = vld [vmem:[%s944_s4 + $0x8] sm:$0xff]  ;;  %v125_v15 = vld [vmem:[%s944_s4 + $0x10] sm:$0xff]  ;;  %v665_v18 = vpack.c.bf16 %v32_v11, %v31_v10 }
   0x5   :  { %656 = vmatpush3.bf16.msra.mxu0 %v653_v4  ;;  %v819_v16 = vpack.c.bf16 %v124_v14, %v123_v13  ;;  %v126_v17 = vld [vmem:[%s944_s4 + $0x18] sm:$0xff]  ;;  %v33_v19 = vld [vmem:[%s942_s1 + $0x40] sm:$0xff]  ;;  %v34_v21 = vld [vmem:[%s942_s1 + $0x48] sm:$0xff]  ;;  %v286_v4 = vlaneseq }
   0x6   :  { %658 = vmatprep.subr.bf16.mxu0 %v657_v6  ;;  %v828_v20 = vpack.c.bf16 %v126_v17, %v125_v15  ;;  %v127_v22 = vld [vmem:[%s944_s4 + $0x20] sm:$0xff]  ;;  %v128_v23 = vld [vmem:[%s944_s4 + $0x28] sm:$0xff]  ;;  %v669_v24 = vpack.c.bf16 %v34_v21, %v33_v19  ;;  %v35_v25 = vld [vmem:[%s942_s1 + $0x50] sm:$0xff] }
   0x7   :  { %687 = vmatpush3.bf16.msra.mxu1 %v819_v16  ;;  %v844_v26 = vpack.c.bf16 %v128_v23, %v127_v22  ;;  %v36_v27 = vld [vmem:[%s942_s1 + $0x58] sm:$0xff]  ;;  %v129_v28 = vld [vmem:[%s944_s4 + $0x30] sm:$0xff]  ;;  %v37_v32 = vld [vmem:[%s942_s1 + $0x60] sm:$0xff]  ;;  %v287_v5 = vshrl.u32 %v286_v4, 7 }
   0x8   :  { %688 = vmatprep.subr.bf16.mxu1 %v744_v3  ;;  %v130_v29 = vld [vmem:[%s944_s4 + $0x38] sm:$0xff]  ;;  %v673_v30 = vpack.c.bf16 %v36_v27, %v35_v25  ;;  %v38_v33 = vld [vmem:[%s942_s1 + $0x68] sm:$0xff]  ;;  %v39_v35 = vld [vmem:[%s942_s1 + $0x70] sm:$0xff] }
   0x9   :  { %660 = vmatpush3.bf16.msra.mxu0 %v657_v6  ;;  %v857_v31 = vpack.c.bf16 %v130_v29, %v129_v28  ;;  %v677_v34 = vpack.c.bf16 %v38_v33, %v37_v32  ;;  %v40_v36 = vld [vmem:[%s942_s1 + $0x78] sm:$0xff]  ;;  %v24_v38 = vld [vmem:[%s943_s0 + $0x8] sm:$0xff]  ;;  %v131_v39 = vld [vmem:[%s944_s4 + $0x40] sm:$0xff]  ;;  %v288_v6 = vsub.s32 0, %v287_v5 }
   0xa   :  { %662 = vmatprep.subr.bf16.mxu0 %v661_v9  ;;  %v681_v37 = vpack.c.bf16 %v40_v36, %v39_v35  ;;  %v132_v40 = vld [vmem:[%s944_s4 + $0x48] sm:$0xff]  ;;  %v133_v42 = vld [vmem:[%s944_s4 + $0x50] sm:$0xff]  ;;  %v134_v43 = vld [vmem:[%s944_s4 + $0x58] sm:$0xff] }
   0xb   :  { %690 = vmatpush3.bf16.msra.mxu1 %v828_v20  ;;  %v698_v41 = vpack.c.bf16 %v132_v40, %v131_v39  ;;  %v701_v44 = vpack.c.bf16 %v134_v43, %v133_v42  ;;  %v135_v45 = vld [vmem:[%s944_s4 + $0x60] sm:$0xff]  ;;  %v136_v46 = vld [vmem:[%s944_s4 + $0x68] sm:$0xff]  ;;  %v137_v48 = vld [vmem:[%s944_s4 + $0x70] sm:$0xff] }
   0xc   :  { %691 = vmatprep.subr.bf16.mxu1 %v744_v3  ;;  %v704_v47 = vpack.c.bf16 %v136_v46, %v135_v45  ;;  %v138_v49 = vld [vmem:[%s944_s4 + $0x78] sm:$0xff]  ;;  %v210_v52 = vld [vmem:[%s945_s5] sm:$0xff]  ;;  %v211_v53 = vld [vmem:[%s945_s5 + $0x8] sm:$0xff] }
   0xd   :  { %664 = vmatpush3.bf16.msra.mxu0 %v661_v9  ;;  %v707_v50 = vpack.c.bf16 %v138_v49, %v137_v48  ;;  %v710_v54 = vpack.c.bf16 %v211_v53, %v210_v52 }
   0xe   :  { %666 = vmatprep.subr.bf16.mxu0 %v665_v18 }
   0xf   :  { %693 = vmatpush3.bf16.msra.mxu1 %v844_v26 }
  0x10   :  { %694 = vmatprep.subr.bf16.mxu1 %v744_v3 }
  0x11   :  { %668 = vmatpush3.bf16.msra.mxu0 %v665_v18 }
  0x12   :  { %670 = vmatprep.subr.bf16.mxu0 %v669_v24 }
  0x13   :  { %696 = vmatpush3.bf16.msra.mxu1 %v857_v31 }
  0x14   :  { %697 = vmatprep.subr.bf16.mxu1 %v744_v3 }
  0x15   :  { %672 = vmatpush3.bf16.msra.mxu0 %v669_v24 }
  0x16   :  { %674 = vmatprep.subr.bf16.mxu0 %v673_v30 }
  0x17   :  { %699 = vmatpush3.bf16.msra.mxu1 %v698_v41 }
  0x18   :  { %700 = vmatprep.subr.bf16.mxu1 %v744_v3 }
  0x19   :  { %676 = vmatpush3.bf16.msra.mxu0 %v673_v30  ;;  %v475_v30 = vld [vmem:[%s947_s3] ss:$0 sm:$0xff] }
  0x1a   :  { %678 = vmatprep.subr.bf16.mxu0 %v677_v34 }
  0x1b   :  { %702 = vmatpush3.bf16.msra.mxu1 %v701_v44 }
  0x1c   :  { %703 = vmatprep.subr.bf16.mxu1 %v744_v3 }
  0x1d   :  { %680 = vmatpush3.bf16.msra.mxu0 %v677_v34 }
  0x1e   :  { %682 = vmatprep.subr.bf16.mxu0 %v681_v37 }
  0x1f   :  { %705 = vmatpush3.bf16.msra.mxu1 %v704_v47 }
  0x20   :  { %706 = vmatprep.subr.bf16.mxu1 %v744_v3 }
  0x21   :  { %684 = vmatpush3.bf16.msra.mxu0 %v681_v37 }
  0x22   :  { %709 = vmatprep.subr.bf16.mxu0 %v744_v3 }
  0x23   :  { %708 = vmatpush3.bf16.msra.mxu1 %v707_v50 }
  0x24   :  { %567 = vmatmul.mubr.f32.vlgmr.msra.gmra.mrb[0].mxu0 %v24_v38  ;;  %712 = vmatprep.subr.bf16.mxu1 %v744_v3 }
  0x25   :  { %608 = vmatprep.mubr.msk.f32.mxu0 %vm745_vm0, %v746_v51  ;;  %711 = vmatpush3.bf16.msra.mxu0 %v710_v54 }
  0x26   :  { %736 = vmatprep.subr.bf16.mxu0 %v744_v3 }
  0xf7   :  { %v568_v55 = vpop.f32.mrb[0].mxu0 }
  0xf8   :  { %v107_v56 = vpop.f32.mrb[1].mxu0 }
  0xf9   :  { %v116_v57 = vadd.f32 %v568_v55, %v107_v56 }
  0xfb   :  { %v117_v58 = vrot.slane %v116_v57, 4 }
  0xfd   :  { %v118_v59 = vadd.f32 %v117_v58, %v116_v57 }
  0xff   :  { %v119_v60 = vrot.slane %v118_v59, 2 }
 0x101   :  { %v120_v61 = vadd.f32 %v119_v60, %v118_v59 }
 0x103   :  { %v121_v62 = vrot.slane %v120_v61, 1 }
 0x105   :  { %v122_v63 = vadd.f32 %v121_v62, %v120_v61 }
 0x107   :  { %602 = vmatmul.mubr.f32.vlgmr.msra.gmra.mrb[0].mxu1 %v122_v63 }
 0x108   :  { %714 = vmatpush3.bf16.msra.mxu1 %v819_v16  ;;  %643 = vmatprep.mubr.msk.f32.mxu1 %vm745_vm0, %v746_v51 }
 0x109   :  { %715 = vmatprep.subr.bf16.mxu1 %v744_v3 }
 0x10c   :  { %717 = vmatpush3.bf16.msra.mxu1 %v828_v20 }
 0x10d   :  { %718 = vmatprep.subr.bf16.mxu1 %v744_v3 }
 0x110   :  { %720 = vmatpush3.bf16.msra.mxu1 %v844_v26  ;;  %v372_v26 = vld [vmem:[%s946_s2] sm:$0x1] }
 0x111   :  { %721 = vmatprep.subr.bf16.mxu1 %v744_v3 }
 0x114   :  { %723 = vmatpush3.bf16.msra.mxu1 %v857_v31 }
 0x115   :  { %724 = vmatprep.subr.bf16.mxu1 %v744_v3 }
 0x118   :  { %726 = vmatpush3.bf16.msra.mxu1 %v698_v41 }
 0x119   :  { %727 = vmatprep.subr.bf16.mxu1 %v744_v3 }
 0x11c   :  { %729 = vmatpush3.bf16.msra.mxu1 %v701_v44 }
 0x11d   :  { %730 = vmatprep.subr.bf16.mxu1 %v744_v3 }
 0x120   :  { %732 = vmatpush3.bf16.msra.mxu1 %v704_v47 }
 0x121   :  { %733 = vmatprep.subr.bf16.mxu1 %v744_v3 }
 0x124   :  { %735 = vmatpush3.bf16.msra.mxu1 %v707_v50 }
 0x1da   :  { %v205_v0 = vpop.f32.mrb[0].mxu1 }
 0x1db   :  { %v209_v1 = vmul.f32 0.0078125, %v205_v0  ;;  %v603_v2 = vpop.f32.mrb[1].mxu1 }
 0x1dd   :  { %609 = vmatmul.mubr.msk.f32.vlgmr.msra.gmra.mrb[2].mxu0 %vm212_vm1, %v209_v1 }
 0x1de   :  { %738 = vmatpush3.bf16.msra.mxu0 %v710_v54  ;;  %650 = vmatprep.mubr.msk.f32.mxu0 %vm745_vm0, %v746_v51 }
 0x2b0   :  { %v282_v7 = vpop.f32.mrb[2].mxu0 }
 0x2b1   :  { %v289_v8 = vrot.slane %v282_v7, %v288_v6  ;;  %v610_v9 = vpop.f32.mrb[3].mxu0 }
 0x2b3   :  { %v290_v10 = vsub.f32 %v107_v56, %v289_v8  ;;  %v291_v11 = vsub.f32 %v568_v55, %v289_v8 }
 0x2b5   :  { %v292_v12 = vmul.f32 %v290_v10, %v290_v10  ;;  %v293_v3 = vmul.f32 %v291_v11, %v291_v11 }
 0x2b7   :  { %v294_v13 = vadd.f32 %v293_v3, %v292_v12 }
 0x2b9   :  { %v295_v14 = vrot.slane %v294_v13, 4 }
 0x2bb   :  { %v296_v15 = vadd.f32 %v295_v14, %v294_v13 }
 0x2bd   :  { %v297_v16 = vrot.slane %v296_v15, 2 }
 0x2bf   :  { %v298_v17 = vadd.f32 %v297_v16, %v296_v15 }
 0x2c1   :  { %v299_v18 = vrot.slane %v298_v17, 1 }
 0x2c3   :  { %v300_v19 = vadd.f32 %v299_v18, %v298_v17 }
 0x2c5   :  { %644 = vmatmul.mubr.f32.vlgmr.msra.gmra.mrb[2].mxu1 %v300_v19 }
 0x398   :  { %v367_v20 = vpop.f32.mrb[2].mxu1 }
 0x399   :  { %v371_v21 = vmul.f32 0.0078125, %v367_v20  ;;  %v645_v22 = vpop.f32.mrb[3].mxu1 }
 0x39b   :  { %651 = vmatmul.mubr.msk.f32.vlgmr.msra.gmra.mrb[4].mxu0 %vm212_vm1, %v371_v21 }
 0x46e   :  { %v442_v23 = vpop.f32.mrb[4].mxu0 }
 0x46f   :  { %v443_v24 = vadd.f32 1e-05, %v442_v23  ;;  %v652_v25 = vpop.f32.mrb[5].mxu0 }
 0x471   :  { %742 = vrsqrt.f32 %v443_v24 }
 0x47b   :  { %v743_v27 = vpop.eup %742 }
 0x47c   :  { %v447_v28 = vmul.f32 %v743_v27, %v372_v26 }
 0x47e   :  { %v452_v29 = vrot.slane %v447_v28, %v288_v6 }
 0x480   :  { %v454_v31 = vmul.f32 %v452_v29, %v290_v10  ;;  %v455_v32 = vmul.f32 %v452_v29, %v291_v11 }
 0x482   :  { %v463_v33 = vadd.f32 %v475_v30, %v454_v31  ;;  %v464_v34 = vadd.f32 %v475_v30, %v455_v32 }
 0x484   :  { %v465_v35 = vmax.f32 %v463_v33, 0.0  ;;  %v466_v36 = vmax.f32 %v464_v34, 0.0 }
 0x486   :  { %467 = vst [vmem:[%s948_s6] sm:$0xff] %v465_v35  ;;  %468 = vst [vmem:[%s948_s6 + $0x8] sm:$0xff] %v466_v36 }

// kernel: encoder_forward.5
= control target key start
LH: loop header
LB: loop body
LE: loop exit
PB: predicated region body
PF: predicated region fallthrough
CT: control target
= control target key end

     0   :  { %v749_v3 = vmov 0.0|0.0   ;;  %vm750_vm0 = vmmov 0   ;;  %vm224_vm1 = vcmask 261120   ;;  %s1000_s1 = inlined_call_operand.vmem [shape: f32[256,128], index: 1, kind: input, shape index: {}]   ;;  %s1001_s0 = inlined_call_operand.vmem [shape: f32[8,256], index: 0, kind: input, shape index: {}]   ;;  %s1002_s4 = inlined_call_operand.vmem [shape: f32[128,32], index: 4, kind: input, shape index: {}]   ;;  %s1003_s5 = inlined_call_operand.vmem [shape: f32[32,128], index: 5, kind: input, shape index: {}]   ;;  %s1004_s2 = inlined_call_operand.vmem [shape: f32[1,128], index: 2, kind: input, shape index: {}]   ;;  %s1005_s3 = inlined_call_operand.vmem [shape: f32[1,128], index: 3, kind: input, shape index: {}]   ;;  %s1006_s6 = inlined_call_operand.vmem [shape: f32[8,128], index: 6, kind: output, shape index: {}]  }
   0x1   :  { %v41_v0 = vld [vmem:[%s1000_s1 + $0x80] sm:$0xff]  ;;  %v42_v1 = vld [vmem:[%s1000_s1 + $0x88] sm:$0xff]  ;;  %684 = vmatprep.subr.bf16.mxu1 %v749_v3  ;;  %v43_v6 = vld [vmem:[%s1000_s1 + $0x90] sm:$0xff] }
   0x2   :  { %v25_v2 = vld [vmem:[%s1000_s1] sm:$0xff]  ;;  %v652_v4 = vpack.c.bf16 %v42_v1, %v41_v0  ;;  %v26_v5 = vld [vmem:[%s1000_s1 + $0x8] sm:$0xff]  ;;  %v44_v7 = vld [vmem:[%s1000_s1 + $0x98] sm:$0xff] }
   0x3   :  { %v654_v8 = vpack.c.bf16 %v26_v5, %v25_v2  ;;  %v656_v9 = vpack.c.bf16 %v44_v7, %v43_v6  ;;  %v27_v10 = vld [vmem:[%s1000_s1 + $0x10] sm:$0xff]  ;;  %v28_v11 = vld [vmem:[%s1000_s1 + $0x18] sm:$0xff]  ;;  %v45_v12 = vld [vmem:[%s1000_s1 + $0xa0] sm:$0xff] }
   0x4   :  { %653 = vmatprep.subr.bf16.mxu0 %v652_v4  ;;  %v46_v13 = vld [vmem:[%s1000_s1 + $0xa8] sm:$0xff]  ;;  %v658_v14 = vpack.c.bf16 %v28_v11, %v27_v10  ;;  %v29_v16 = vld [vmem:[%s1000_s1 + $0x20] sm:$0xff]  ;;  %v47_v18 = vld [vmem:[%s1000_s1 + $0xb0] sm:$0xff] }
   0x5   :  { %655 = vmatpush3.bf16.msra.mxu0 %v654_v8  ;;  %v660_v15 = vpack.c.bf16 %v46_v13, %v45_v12  ;;  %v30_v17 = vld [vmem:[%s1000_s1 + $0x28] sm:$0xff]  ;;  %v48_v19 = vld [vmem:[%s1000_s1 + $0xb8] sm:$0xff]  ;;  %v31_v22 = vld [vmem:[%s1000_s1 + $0x30] sm:$0xff]  ;;  %v751_v12 = vmov 0.0  }
   0x6   :  { %657 = vmatprep.subr.bf16.mxu0 %v656_v9  ;;  %v662_v20 = vpack.c.bf16 %v30_v17, %v29_v16  ;;  %v664_v21 = vpack.c.bf16 %v48_v19, %v47_v18  ;;  %v32_v23 = vld [vmem:[%s1000_s1 + $0x38] sm:$0xff]  ;;  %v49_v24 = vld [vmem:[%s1000_s1 + $0xc0] sm:$0xff]  ;;  %v50_v25 = vld [vmem:[%s1000_s1 + $0xc8] sm:$0xff]  ;;  %592 = vmatprep.mubr.msk.f32.mxu1 %vm750_vm0, %v751_v12 }
   0x7   :  { %v24_v26 = vld [vmem:[%s1001_s0 + $0x8] sm:$0xff]  ;;  %v133_v27 = vld [vmem:[%s1002_s4] sm:$0xff]  ;;  %v666_v29 = vpack.c.bf16 %v32_v23, %v31_v22  ;;  %v135_v31 = vld [vmem:[%s1002_s4 + $0x10] sm:$0xff]  ;;  %v668_v33 = vpack.c.bf16 %v50_v25, %v49_v24 }
   0x8   :  { %121 = vmatprep.mubr.f32.mxu0 %v24_v26  ;;  %v134_v28 = vld [vmem:[%s1002_s4 + $0x8] sm:$0xff]  ;;  %v136_v32 = vld [vmem:[%s1002_s4 + $0x18] sm:$0xff]  ;;  %v33_v34 = vld [vmem:[%s1000_s1 + $0x40] sm:$0xff] }
   0x9   :  { %659 = vmatpush3.bf16.msra.mxu0 %v658_v14  ;;  %v851_v30 = vpack.c.bf16 %v134_v28, %v133_v27  ;;  %v34_v35 = vld [vmem:[%s1000_s1 + $0x48] sm:$0xff]  ;;  %v51_v36 = vld [vmem:[%s1000_s1 + $0xd0] sm:$0xff]  ;;  %v52_v37 = vld [vmem:[%s1000_s1 + $0xd8] sm:$0xff]  ;;  %v872_v38 = vpack.c.bf16 %v136_v32, %v135_v31  ;;  %v298_v31 = vlaneseq }
   0xa   :  { %661 = vmatprep.subr.bf16.mxu0 %v660_v15  ;;  %v137_v39 = vld [vmem:[%s1002_s4 + $0x20] sm:$0xff]  ;;  %v138_v40 = vld [vmem:[%s1002_s4 + $0x28] sm:$0xff]  ;;  %v670_v41 = vpack.c.bf16 %v34_v35, %v33_v34  ;;  %v672_v42 = vpack.c.bf16 %v52_v37, %v51_v36  ;;  %v35_v43 = vld [vmem:[%s1000_s1 + $0x50] sm:$0xff] }
   0xb   :  { %686 = vmatpush3.bf16.msra.mxu1 %v851_v30  ;;  %v36_v44 = vld [vmem:[%s1000_s1 + $0x58] sm:$0xff]  ;;  %v53_v45 = vld [vmem:[%s1000_s1 + $0xe0] sm:$0xff]  ;;  %v54_v46 = vld [vmem:[%s1000_s1 + $0xe8] sm:$0xff]  ;;  %v894_v47 = vpack.c.bf16 %v138_v40, %v137_v39  ;;  %v299_v32 = vshrl.u32 %v298_v31, 7 }
   0xc   :  { %687 = vmatprep.subr.bf16.mxu1 %v749_v3  ;;  %v139_v48 = vld [vmem:[%s1002_s4 + $0x30] sm:$0xff]  ;;  %v140_v49 = vld [vmem:[%s1002_s4 + $0x38] sm:$0xff]  ;;  %v674_v50 = vpack.c.bf16 %v36_v44, %v35_v43  ;;  %v676_v51 = vpack.c.bf16 %v54_v46, %v53_v45  ;;  %v37_v52 = vld [vmem:[%s1000_s1 + $0x60] sm:$0xff] }
   0xd   :  { %663 = vmatpush3.bf16.msra.mxu0 %v662_v20  ;;  %v38_v53 = vld [vmem:[%s1000_s1 + $0x68] sm:$0xff]  ;;  %v55_v54 = vld [vmem:[%s1000_s1 + $0xf0] sm:$0xff]  ;;  %v56_v55 = vld [vmem:[%s1000_s1 + $0xf8] sm:$0xff]  ;;  %v916_v56 = vpack.c.bf16 %v140_v49, %v139_v48 }
   0xe   :  { %665 = vmatprep.subr.bf16.mxu0 %v664_v21  ;;  %v678_v57 = vpack.c.bf16 %v38_v53, %v37_v52  ;;  %v680_v58 = vpack.c.bf16 %v56_v55, %v55_v54  ;;  %v39_v59 = vld [vmem:[%s1000_s1 + $0x70] sm:$0xff]  ;;  %v40_v60 = vld [vmem:[%s1000_s1 + $0x78] sm:$0xff]  ;;  %v23_v62 = vld [vmem:[%s1001_s0] sm:$0xff] }
   0xf   :  { %689 = vmatpush3.bf16.msra.mxu1 %v872_v38  ;;  %v682_v61 = vpack.c.bf16 %v40_v60, %v39_v59  ;;  %v141_v63 = vld [vmem:[%s1002_s4 + $0x40] sm:$0xff]  ;;  %v142_v0 = vld [vmem:[%s1002_s4 + $0x48] sm:$0xff]  ;;  %v143_v2 = vld [vmem:[%s1002_s4 + $0x50] sm:$0xff] }
  0x10   :  { %690 = vmatprep.subr.bf16.mxu1 %v749_v3  ;;  %v697_v1 = vpack.c.bf16 %v142_v0, %v141_v63  ;;  %v144_v4 = vld [vmem:[%s1002_s4 + $0x58] sm:$0xff]  ;;  %v145_v6 = vld [vmem:[%s1002_s4 + $0x60] sm:$0xff]  ;;  %v146_v7 = vld [vmem:[%s1002_s4 + $0x68] sm:$0xff] }
  0x11   :  { %667 = vmatpush3.bf16.msra.mxu0 %v666_v29  ;;  %v700_v5 = vpack.c.bf16 %v144_v4, %v143_v2  ;;  %v703_v8 = vpack.c.bf16 %v146_v7, %v145_v6  ;;  %v147_v9 = vld [vmem:[%s1002_s4 + $0x70] sm:$0xff]  ;;  %v148_v10 = vld [vmem:[%s1002_s4 + $0x78] sm:$0xff]  ;;  %v220_v13 = vld [vmem:[%s1003_s5] sm:$0xff] }
  0x12   :  { %669 = vmatprep.subr.bf16.mxu0 %v668_v33  ;;  %v706_v11 = vpack.c.bf16 %v148_v10, %v147_v9  ;;  %v221_v14 = vld [vmem:[%s1003_s5 + $0x8] sm:$0xff]  ;;  %v222_v25 = vld [vmem:[%s1003_s5 + $0x10] sm:$0xff]  ;;  %v223_v26 = vld [vmem:[%s1003_s5 + $0x18] sm:$0xff]  ;;  %v300_v33 = vsub.s32 0, %v299_v32 }
  0x13   :  { %692 = vmatpush3.bf16.msra.mxu1 %v894_v47  ;;  %v709_v15 = vpack.c.bf16 %v221_v14, %v220_v13  ;;  %v712_v27 = vpack.c.bf16 %v223_v26, %v222_v25  ;;  %v480_v54 = vld [vmem:[%s1005_s3] ss:$0 sm:$0xff] }
  0x14   :  { %693 = vmatprep.subr.bf16.mxu1 %v749_v3 }
  0x15   :  { %671 = vmatpush3.bf16.msra.mxu0 %v670_v41 }
  0x16   :  { %673 = vmatprep.subr.bf16.mxu0 %v672_v42 }
  0x17   :  { %695 = vmatpush3.bf16.msra.mxu1 %v916_v56 }
  0x18   :  { %696 = vmatprep.subr.bf16.mxu1 %v749_v3 }
  0x19   :  { %675 = vmatpush3.bf16.msra.mxu0 %v674_v50  ;;  %v381_v50 = vld [vmem:[%s1004_s2] sm:$0x1] }
  0x1a   :  { %677 = vmatprep.subr.bf16.mxu0 %v676_v51 }
  0x1b   :  { %698 = vmatpush3.bf16.msra.mxu1 %v697_v1 }
  0x1c   :  { %699 = vmatprep.subr.bf16.mxu1 %v749_v3 }
  0x1d   :  { %679 = vmatpush3.bf16.msra.mxu0 %v678_v57 }
  0x1e   :  { %681 = vmatprep.subr.bf16.mxu0 %v680_v58 }
  0x1f   :  { %701 = vmatpush3.bf16.msra.mxu1 %v700_v5 }
  0x20   :  { %702 = vmatprep.subr.bf16.mxu1 %v749_v3 }
  0x21   :  { %683 = vmatpush3.bf16.msra.mxu0 %v682_v61 }
  0x22   :  { %708 = vmatprep.subr.bf16.mxu0 %v749_v3 }
  0x23   :  { %704 = vmatpush3.bf16.msra.mxu1 %v703_v8 }
  0x24   :  { %122 = vmatmul.mubr.f32.vlgmr.msra.gmra.mrb[0].mxu0 %v23_v62  ;;  %705 = vmatprep.subr.bf16.mxu1 %v749_v3 }
  0x25   :  { %603 = vmatprep.mubr.msk.f32.mxu0 %vm750_vm0, %v751_v12  ;;  %710 = vmatpush3.bf16.msra.mxu0 %v709_v15 }
  0x26   :  { %711 = vmatprep.subr.bf16.mxu0 %v749_v3 }
  0x27   :  { %707 = vmatpush3.bf16.msra.mxu1 %v706_v11 }
  0x28   :  { %714 = vmatprep.subr.bf16.mxu1 %v749_v3 }
  0x29   :  { %713 = vmatpush3.bf16.msra.mxu0 %v712_v27 }
  0x2a   :  { %738 = vmatprep.subr.bf16.mxu0 %v749_v3 }
  0xf7   :  { %v513_v16 = vpop.f32.mrb[0].mxu0 }
  0xf8   :  { %v514_v17 = vpop.f32.mrb[1].mxu0 }
  0xf9   :  { %v515_v18 = vadd.f32 %v514_v17, %v513_v16 }
  0xfb   :  { %v127_v19 = vrot.slane %v515_v18, 4 }
  0xfd   :  { %v128_v20 = vadd.f32 %v515_v18, %v127_v19 }
  0xff   :  { %v129_v21 = vrot.slane %v128_v20, 2 }
 0x101   :  { %v130_v22 = vadd.f32 %v129_v21, %v128_v20 }
 0x103   :  { %v131_v23 = vrot.slane %v130_v22, 1 }
 0x105   :  { %v132_v24 = vadd.f32 %v131_v23, %v130_v22 }
 0x107   :  { %593 = vmatmul.mubr.f32.vlgmr.msra.gmra.mrb[0].mxu1 %v132_v24 }
 0x108   :  { %716 = vmatpush3.bf16.msra.mxu1 %v851_v30  ;;  %638 = vmatprep.mubr.msk.f32.mxu1 %vm750_vm0, %v751_v12 }
 0x109   :  { %717 = vmatprep.subr.bf16.mxu1 %v749_v3 }
 0x10c   :  { %719 = vmatpush3.bf16.msra.mxu1 %v872_v38 }
 0x10d   :  { %720 = vmatprep.subr.bf16.mxu1 %v749_v3 }
 0x110   :  { %722 = vmatpush3.bf16.msra.mxu1 %v894_v47 }
 0x111   :  { %723 = vmatprep.subr.bf16.mxu1 %v749_v3 }
 0x114   :  { %725 = vmatpush3.bf16.msra.mxu1 %v916_v56 }
 0x115   :  { %726 = vmatprep.subr.bf16.mxu1 %v749_v3 }
 0x118   :  { %728 = vmatpush3.bf16.msra.mxu1 %v697_v1 }
 0x119   :  { %729 = vmatprep.subr.bf16.mxu1 %v749_v3 }
 0x11c   :  { %731 = vmatpush3.bf16.msra.mxu1 %v700_v5 }
 0x11d   :  { %732 = vmatprep.subr.bf16.mxu1 %v749_v3 }
 0x120   :  { %734 = vmatpush3.bf16.msra.mxu1 %v703_v8 }
 0x121   :  { %735 = vmatprep.subr.bf16.mxu1 %v749_v3 }
 0x124   :  { %737 = vmatpush3.bf16.msra.mxu1 %v706_v11 }
 0x1da   :  { %v215_v28 = vpop.f32.mrb[0].mxu1 }
 0x1db   :  { %v219_v29 = vmul.f32 0.03125, %v215_v28  ;;  %v594_v30 = vpop.f32.mrb[1].mxu1 }
 0x1dd   :  { %604 = vmatmul.mubr.msk.f32.vlgmr.msra.gmra.mrb[2].mxu0 %vm224_vm1, %v219_v29 }
 0x1de   :  { %740 = vmatpush3.bf16.msra.mxu0 %v709_v15  ;;  %649 = vmatprep.mubr.msk.f32.mxu0 %vm750_vm0, %v751_v12 }
 0x1df   :  { %741 = vmatprep.subr.bf16.mxu0 %v749_v3 }
 0x1e2   :  { %743 = vmatpush3.bf16.msra.mxu0 %v712_v27 }
 0x2b0   :  { %v294_v34 = vpop.f32.mrb[2].mxu0 }
 0x2b1   :  { %v301_v35 = vrot.slane %v294_v34, %v300_v33  ;;  %v605_v36 = vpop.f32.mrb[3].mxu0 }
 0x2b3   :  { %v302_v37 = vsub.f32 %v515_v18, %v301_v35 }
 0x2b5   :  { %v303_v38 = vmul.f32 %v302_v37, %v302_v37 }
 0x2b7   :  { %v304_v39 = vrot.slane %v303_v38, 4 }
 0x2b9   :  { %v305_v40 = vadd.f32 %v304_v39, %v303_v38 }
 0x2bb   :  { %v306_v41 = vrot.slane %v305_v40, 2 }
 0x2bd   :  { %v307_v42 = vadd.f32 %v306_v41, %v305_v40 }
 0x2bf   :  { %v308_v43 = vrot.slane %v307_v42, 1 }
 0x2c1   :  { %v309_v44 = vadd.f32 %v308_v43, %v307_v42 }
 0x2c3   :  { %639 = vmatmul.mubr.f32.vlgmr.msra.gmra.mrb[2].mxu1 %v309_v44 }
 0x396   :  { %v376_v45 = vpop.f32.mrb[2].mxu1 }
 0x397   :  { %v380_v46 = vmul.f32 0.03125, %v376_v45  ;;  %v640_v47 = vpop.f32.mrb[3].mxu1 }
 0x399   :  { %650 = vmatmul.mubr.msk.f32.vlgmr.msra.gmra.mrb[4].mxu0 %vm224_vm1, %v380_v46 }
 0x46c   :  { %v451_v3 = vpop.f32.mrb[4].mxu0 }
 0x46d   :  { %v452_v48 = vadd.f32 1e-05, %v451_v3  ;;  %v651_v49 = vpop.f32.mrb[5].mxu0 }
 0x46f   :  { %747 = vrsqrt.f32 %v452_v48 }
 0x479   :  { %v748_v51 = vpop.eup %747 }
 0x47a   :  { %v456_v52 = vmul.f32 %v748_v51, %v381_v50 }
 0x47c   :  { %v461_v53 = vrot.slane %v456_v52, %v300_v33 }
 0x47e   :  { %v463_v55 = vmul.f32 %v461_v53, %v302_v37 }
 0x480   :  { %v471_v56 = vadd.f32 %v480_v54, %v463_v55 }
 0x482   :  { %v472_v57 = vmax.f32 %v471_v56, 0.0 }
 0x484   :  { %473 = vst [vmem:[%s1006_s6] sm:$0xff] %v472_v57 }

// kernel: encoder_forward.7
= control target key start
LH: loop header
LB: loop body
LE: loop exit
PB: predicated region body
PF: predicated region fallthrough
CT: control target
= control target key end

     0   :  { %s234_s30 = smov 96   ;;  %s235_s6 = smov 64   ;;  %vm152_vm0 = vcmask 523264   ;;  %vm154_vm1 = vcmask 785408   ;;  %s369_s1 = inlined_call_operand.vmem [shape: f32[256,64], index: 1, kind: input, shape index: {}]   ;;  %s370_s0 = inlined_call_operand.vmem [shape: f32[2,256], index: 0, kind: input, shape index: {}]   ;;  %s371_s2 = inlined_call_operand.vmem [shape: f32[1,64], index: 2, kind: input, shape index: {}]   ;;  %s372_s3 = inlined_call_operand.vmem [shape: f32[2,32], index: 3, kind: input, shape index: {}]   ;;  %s373_s4 = inlined_call_operand.vmem [shape: f32[2,128], index: 4, kind: output, shape index: {}]  }
   0x1   :  { %v34_v0 = vld [vmem:[%s369_s1 + $0x80] sm:$0xff]  ;;  %v35_v1 = vld [vmem:[%s369_s1 + $0x88] sm:$0xff]  ;;  %v36_v5 = vld [vmem:[%s369_s1 + $0x90] sm:$0xff] }
   0x2   :  { %v18_v2 = vld [vmem:[%s369_s1] sm:$0xff]  ;;  %v198_v3 = vpack.c.bf16 %v35_v1, %v34_v0  ;;  %v19_v4 = vld [vmem:[%s369_s1 + $0x8] sm:$0xff]  ;;  %v37_v6 = vld [vmem:[%s369_s1 + $0x98] sm:$0xff] }
   0x3   :  { %v200_v7 = vpack.c.bf16 %v19_v4, %v18_v2  ;;  %v202_v8 = vpack.c.bf16 %v37_v6, %v36_v5  ;;  %v20_v9 = vld [vmem:[%s369_s1 + $0x10] sm:$0xff]  ;;  %v21_v10 = vld [vmem:[%s369_s1 + $0x18] sm:$0xff]  ;;  %v38_v11 = vld [vmem:[%s369_s1 + $0xa0] sm:$0xff] }
   0x4   :  { %199 = vmatprep.subr.bf16.mxu0 %v198_v3  ;;  %v39_v12 = vld [vmem:[%s369_s1 + $0xa8] sm:$0xff]  ;;  %v204_v13 = vpack.c.bf16 %v21_v10, %v20_v9  ;;  %v22_v15 = vld [vmem:[%s369_s1 + $0x20] sm:$0xff]  ;;  %v40_v17 = vld [vmem:[%s369_s1 + $0xb0] sm:$0xff] }
   0x5   :  { %201 = vmatpush3.bf16.msra.mxu0 %v200_v7  ;;  %v206_v14 = vpack.c.bf16 %v39_v12, %v38_v11  ;;  %v23_v16 = vld [vmem:[%s369_s1 + $0x28] sm:$0xff]  ;;  %v41_v18 = vld [vmem:[%s369_s1 + $0xb8] sm:$0xff]  ;;  %v24_v21 = vld [vmem:[%s369_s1 + $0x30] sm:$0xff] }
   0x6   :  { %203 = vmatprep.subr.bf16.mxu0 %v202_v8  ;;  %v208_v19 = vpack.c.bf16 %v23_v16, %v22_v15  ;;  %v210_v20 = vpack.c.bf16 %v41_v18, %v40_v17  ;;  %v25_v22 = vld [vmem:[%s369_s1 + $0x38] sm:$0xff]  ;;  %v42_v23 = vld [vmem:[%s369_s1 + $0xc0] sm:$0xff]  ;;  %v43_v24 = vld [vmem:[%s369_s1 + $0xc8] sm:$0xff] }
   0x7   :  { %v162_v25 = vld.sshfl [vmem:[%s370_s0] sm:$0x33 pattern:$0x76325410]  ;;  %v212_v27 = vpack.c.bf16 %v25_v22, %v24_v21  ;;  %v214_v28 = vpack.c.bf16 %v43_v24, %v42_v23  ;;  %v27_v30 = vld [vmem:[%s369_s1 + $0x48] sm:$0xff]  ;;  %v44_v31 = vld [vmem:[%s369_s1 + $0xd0] sm:$0xff] }
   0x8   :  { %v65_v26 = vcombine.high %v162_v25, %v162_v25  ;;  %v26_v29 = vld [vmem:[%s369_s1 + $0x40] sm:$0xff]  ;;  %v45_v32 = vld [vmem:[%s369_s1 + $0xd8] sm:$0xff]  ;;  %v28_v35 = vld [vmem:[%s369_s1 + $0x50] sm:$0xff] }
   0x9   :  { %205 = vmatpush3.bf16.msra.mxu0 %v204_v13  ;;  %v216_v33 = vpack.c.bf16 %v27_v30, %v26_v29  ;;  %v218_v34 = vpack.c.bf16 %v45_v32, %v44_v31  ;;  %v29_v36 = vld [vmem:[%s369_s1 + $0x58] sm:$0xff]  ;;  %v46_v37 = vld [vmem:[%s369_s1 + $0xe0] sm:$0xff]  ;;  %v47_v38 = vld [vmem:[%s369_s1 + $0xe8] sm:$0xff] }
   0xa   :  { %207 = vmatprep.subr.bf16.mxu0 %v206_v14  ;;  %132 = vmatprep.mubr.f32.mxu0 %v65_v26  ;;  %v220_v39 = vpack.c.bf16 %v29_v36, %v28_v35  ;;  %v222_v40 = vpack.c.bf16 %v47_v38, %v46_v37  ;;  %v30_v41 = vld [vmem:[%s369_s1 + $0x60] sm:$0xff]  ;;  %v31_v42 = vld [vmem:[%s369_s1 + $0x68] sm:$0xff]  ;;  %v48_v43 = vld [vmem:[%s369_s1 + $0xf0] sm:$0xff] }
   0xb   :  { %v49_v44 = vld [vmem:[%s369_s1 + $0xf8] sm:$0xff]  ;;  %v224_v45 = vpack.c.bf16 %v31_v42, %v30_v41  ;;  %v32_v47 = vld [vmem:[%s369_s1 + $0x70] sm:$0xff]  ;;  %v161_v51 = vld [vmem:[%s371_s2] ss:$0 sm:$0xff] }
   0xc   :  { %v226_v46 = vpack.c.bf16 %v49_v44, %v48_v43  ;;  %v33_v48 = vld [vmem:[%s369_s1 + $0x78] sm:$0xff]  ;;  %v138_v58 = vld [vmem:[%s372_s3] sm:$0x3] }
   0xd   :  { %209 = vmatpush3.bf16.msra.mxu0 %v208_v19  ;;  %v228_v49 = vpack.c.bf16 %v33_v48, %v32_v47 }
   0xe   :  { %211 = vmatprep.subr.bf16.mxu0 %v210_v20 }
  0x11   :  { %213 = vmatpush3.bf16.msra.mxu0 %v212_v27 }
  0x12   :  { %215 = vmatprep.subr.bf16.mxu0 %v214_v28 }
  0x15   :  { %217 = vmatpush3.bf16.msra.mxu0 %v216_v33 }
  0x16   :  { %219 = vmatprep.subr.bf16.mxu0 %v218_v34 }
  0x19   :  { %221 = vmatpush3.bf16.msra.mxu0 %v220_v39 }
  0x1a   :  { %223 = vmatprep.subr.bf16.mxu0 %v222_v40 }
  0x1d   :  { %225 = vmatpush3.bf16.msra.mxu0 %v224_v45 }
  0x1e   :  { %227 = vmatprep.subr.bf16.mxu0 %v226_v46 }
  0x21   :  { %229 = vmatpush3.bf16.msra.mxu0 %v228_v49 }
  0x24   :  { %133 = vmatmul.mubr.f32.vlgmr.msra.gmra.mrb[0].mxu0 %v162_v25 }
  0xf7   :  { %v195_v50 = vpop.f32.mrb[0].mxu0 }
  0xf8   :  { %v196_v52 = vpop.f32.mrb[1].mxu0 }
  0xf9   :  { %v197_v53 = vadd.f32 %v196_v52, %v195_v50 }
  0xfb   :  { %v135_v54 = vadd.f32 %v197_v53, %v161_v51 }
  0xfd   :  { %v139_v55 = vmul.f32 0.5, %v135_v54 }
  0xff   :  { %v140_v56 = vmul.f32 1.442695, %v139_v55 }
 0x101   :  { %232 = vpow2.f32 %v140_v56 }
 0x10b   :  { %v233_v57 = vpop.eup %232 }
 0x10c   :  { %143 = vrot.lane.b32.xlu0 %v233_v57, %s234_s30 }
 0x17e   :  { %v144_v59 = vpop.permute.xlu0 %143 }
 0x17f   :  { %v146_v60 = vmul.f32 %v144_v59, %v138_v58 }
 0x181   :  { %v147_v61 = vadd.f32 %v146_v60, %v135_v54 }
 0x183   :  { %149 = vrot.lane.b32.xlu0 %v147_v61, %s235_s6 }
 0x1f5   :  { %v150_v62 = vpop.permute.xlu0 %149 }
 0x1f6   :  { %v153_v63 = vsel %vm152_vm0, %v135_v54, %v150_v62 }
 0x1f7   :  { %v155_v0 = vsel %vm154_vm1, %v153_v63, 0.0 }
 0x1f8   :  { %156 = vst [vmem:[%s373_s4] sm:$0x3] %v155_v0 }

</bundles_post_ra>
